<compile_context>
chip_gen: v6e
topology: v6e:2x2x1
jax: 0.10.0
libtpu: 0.0.40
codegen_flags: <defaults>
</compile_context>

<pallas_src>
import jax
import jax.numpy as jnp
from jax import lax
from jax.experimental import pallas as pl
from jax.experimental.pallas import tpu as pltpu

# ----------------------------- static dimensions -----------------------------
CIN, COUT, K = 3, 16, 3
H = W = 16
HW = H * W                     # 256
KKC = K * K * CIN              # 27
KKC_PAD = 32                   # im2col features padded to a sublane multiple
G = 8                          # samples fused per conv matmul (K = G*KKC_PAD = 256)
NOUT = 10
NOUT_PAD = 128                 # lane-dense logits width
TB_MAX = 128                   # batch tile per grid step (multiple of G)
                               # (128 is safe on v5e; 256 is a good choice on v6e/v7x)


# ------------------------------- Pallas kernel --------------------------------
def _fused_kernel(p_ref, cw_ref, cb_ref, fw_ref, fb_ref, o_ref, act_ref):
    """One TB-sample batch tile per grid step.

    p_ref  : (NG, G*KKC_PAD, HW)  bf16  im2col patches, G samples stacked along K
    cw_ref : (G*COUT, G*KKC_PAD)  bf16  block-diagonal conv weights
    cb_ref : (G*COUT, 1)          f32   conv bias, row (c*G+g) -> bias[c]
    fw_ref : (COUT*HW, NOUT_PAD)  bf16  FC weights (fc_w transposed, zero padded)
    fb_ref : (1, NOUT_PAD)        f32   FC bias (zero padded)
    o_ref  : (TB, NOUT_PAD)       f32   logits (lane-dense)
    act_ref: (TB, COUT*HW)        f32   VMEM scratch, PyTorch NCHW-flatten layout
    """
    ng = p_ref.shape[0]

    # ---- conv + bias + ReLU: one (128,256)@(256,256) MXU matmul per G samples
    for n in range(ng):
        conv = jnp.dot(cw_ref[...], p_ref[n],
                       preferred_element_type=jnp.float32)        # (G*COUT, HW)
        act = jnp.maximum(conv + cb_ref[...], 0.0)                 # f32
        # scatter into FC layout: row = sample (n*G+g), col = c*HW + hw
        # (static, (8,256)-aligned stores -> no relayout)
        for c in range(COUT):
            act_ref[n * G:(n + 1) * G, c * HW:(c + 1) * HW] = \
                act[c * G:(c + 1) * G, :]

    # ---- FC: one (TB, 4096) @ (4096, 128) MXU matmul, batch tile as M
    a = act_ref[...].astype(jnp.bfloat16)
    o_ref[...] = (jnp.dot(a, fw_ref[...], preferred_element_type=jnp.float32)
                  + fb_ref[...])


# --------------------------- host-side preparation ----------------------------
def prepare_params(params):
    """One-time re-layout of PyTorch-style parameters for the fused kernel."""
    conv_w = params["conv_w"]          # (16, 3, 3, 3)  (out, in, kh, kw)
    conv_b = params["conv_b"]          # (16,)
    fc_w = params["fc_w"]              # (10, 4096)     (out, in)
    fc_b = params["fc_b"]              # (10,)

    # conv weight matrix, feature index f = (kh*3 + kw)*CIN + cin
    cw = jnp.transpose(conv_w, (0, 2, 3, 1)).reshape(COUT, KKC)
    cw = jnp.pad(cw, ((0, 0), (0, KKC_PAD - KKC)))                 # (16, 32)
    # block-diagonal over G samples: rows (c*G + g), cols (g*KKC_PAD + f)
    cw_bd = jnp.einsum("gk,cf->cgkf", jnp.eye(G, dtype=cw.dtype), cw)
    cw_bd = cw_bd.reshape(COUT * G, G * KKC_PAD).astype(jnp.bfloat16)
    cb = jnp.repeat(conv_b, G).reshape(COUT * G, 1).astype(jnp.float32)

    # FC weight transposed to (in, out) and lane-padded: col index = c*HW + hw
    fw = jnp.pad(fc_w.T, ((0, 0), (0, NOUT_PAD - NOUT))).astype(jnp.bfloat16)
    fb = jnp.pad(fc_b, (0, NOUT_PAD - NOUT)).reshape(1, NOUT_PAD).astype(jnp.float32)
    return {"cw_bd": cw_bd, "cb": cb, "fw": fw, "fb": fb}


def _im2col(x_nchw):
    """(B, CIN, H, W) f32 -> (B, KKC_PAD, HW) bf16 with feature f = tap*CIN + cin."""
    b = x_nchw.shape[0]
    x = jnp.transpose(x_nchw, (0, 2, 3, 1))                        # (B, H, W, CIN)
    xp = jnp.pad(x, ((0, 0), (1, 1), (1, 1), (0, 0)))              # (B, H+2, W+2, CIN)
    taps = [xp[:, i:i + H, j:j + W, :] for i in range(K) for j in range(K)]
    p = jnp.stack(taps, axis=1)                                    # (B, 9, H, W, CIN)
    p = jnp.transpose(p, (0, 1, 4, 2, 3)).reshape(b, KKC, HW)      # (B, 27, 256)
    p = jnp.pad(p, ((0, 0), (0, KKC_PAD - KKC), (0, 0)))           # (B, 32, 256)
    return p.astype(jnp.bfloat16)


# --------------------------------- forward ------------------------------------
def asl_translator_forward(x_nchw, prep, tb_max=TB_MAX):
    """x_nchw: (B, 3, 16, 16) float32 -> logits (B, 10) float32."""
    b = x_nchw.shape[0]
    tb = min(tb_max, G * ((b + G - 1) // G))           # batch tile, multiple of G
    b_pad = tb * ((b + tb - 1) // tb)
    if b_pad != b:
        x_nchw = jnp.pad(x_nchw, ((0, b_pad - b), (0, 0), (0, 0), (0, 0)))

    patches = _im2col(x_nchw)                                      # (B_pad, 32, 256)
    p_bd = patches.reshape(b_pad // G, G * KKC_PAD, HW)            # G samples along K

    ng = tb // G
    grid = (b_pad // tb,)

    out = pl.pallas_call(
        _fused_kernel,
        out_shape=jax.ShapeDtypeStruct((b_pad, NOUT_PAD), jnp.float32),
        grid_spec=pltpu.PrefetchScalarGridSpec(
            num_scalar_prefetch=0,
            grid=grid,
            in_specs=[
                pl.BlockSpec((ng, G * KKC_PAD, HW), lambda i: (i, 0, 0)),
                pl.BlockSpec((COUT * G, G * KKC_PAD), lambda i: (0, 0)),
                pl.BlockSpec((COUT * G, 1), lambda i: (0, 0)),
                pl.BlockSpec((COUT * HW, NOUT_PAD), lambda i: (0, 0)),
                pl.BlockSpec((1, NOUT_PAD), lambda i: (0, 0)),
            ],
            out_specs=pl.BlockSpec((tb, NOUT_PAD), lambda i: (i, 0)),
            scratch_shapes=[pltpu.VMEM((tb, COUT * HW), jnp.float32)],
        ),
        compiler_params=pltpu.CompilerParams(
            dimension_semantics=("parallel",),
            vmem_limit_bytes=32 * 1024 * 1024,
        ),
    )(p_bd, prep["cw_bd"], prep["cb"], prep["fw"], prep["fb"])

    return out[:b, :NOUT]


# ------------------------------ reference & init -------------------------------
def _reference_forward(x, params):
    out = lax.conv_general_dilated(
        x, params["conv_w"], window_strides=(1, 1),
        padding=((1, 1), (1, 1)),
        dimension_numbers=("NCHW", "OIHW", "NCHW"))
    out = jnp.maximum(out + params["conv_b"].reshape(1, COUT, 1, 1), 0.0)
    out = out.reshape(x.shape[0], -1)
    return out @ params["fc_w"].T + params["fc_b"]


def init_params(key):
    k1, k2, k3, k4 = jax.random.split(key, 4)
    return {
        "conv_w": 0.05 * jax.random.normal(k1, (COUT, CIN, K, K), jnp.float32),
        "conv_b": 0.05 * jax.random.normal(k2, (COUT,), jnp.float32),
        "fc_w": 0.01 * jax.random.normal(k3, (NOUT, COUT * H * W), jnp.float32),
        "fc_b": 0.01 * jax.random.normal(k4, (NOUT,), jnp.float32),
    }


if __name__ == "__main__":
    key = jax.random.PRNGKey(0)
    kx, kp = jax.random.split(key)

    params = init_params(kp)
    prep = prepare_params(params)          # one-time weight re-layout
    fwd = jax.jit(asl_translator_forward)

    # small deterministic batch (single grid step, ng = 1)
    B = 2
    x = jax.random.normal(kx, (B, CIN, H, W), jnp.float32)   # NCHW like PyTorch
    out = jax.block_until_ready(fwd(x, prep))
    assert out.shape == (B, NOUT) and out.dtype == jnp.float32
    ref = _reference_forward(x, params)
    assert float(jnp.max(jnp.abs(out - ref))) < 5e-2, "mismatch vs f32 reference"

    # larger batch: exercises batch padding + multi-step grid (grid = (2,))
    B2 = 130
    x2 = jax.random.normal(kx, (B2, CIN, H, W), jnp.float32)
    out2 = jax.block_until_ready(fwd(x2, prep))
    assert out2.shape == (B2, NOUT)
    ref2 = _reference_forward(x2, params)
    assert float(jnp.max(jnp.abs(out2 - ref2))) < 5e-2, "mismatch vs f32 reference"

    print("KERNEL_OK")
</pallas_src>

<mosaic_0001>
module attributes {stable_mosaic.version = 11 : i64} {
  func.func @_fused_kernel(%arg0: i32, %arg1: memref<1x256x256xbf16, #tpu.memory_space<vmem>>, %arg2: memref<128x256xbf16, #tpu.memory_space<vmem>>, %arg3: memref<128x1xf32, #tpu.memory_space<vmem>>, %arg4: memref<4096x128xbf16, #tpu.memory_space<vmem>>, %arg5: memref<1x128xf32, #tpu.memory_space<vmem>>, %arg6: memref<8x128xf32, #tpu.memory_space<vmem>>, %arg7: memref<8x4096xf32, #tpu.memory_space<vmem>>) attributes {dimension_semantics = [#tpu.dimension_semantics<parallel>], iteration_bounds = array<i64: 1>, scalar_prefetch = 0 : i64, scratch_operands = 1 : i64, tpu.core_type = #tpu.core_type<tc>, window_params = [{transform_indices = @transform_0, window_bounds = array<i64: 1, 256, 256>}, {pipeline_mode = #tpu.pipeline_mode<synchronous>, transform_indices = @transform_1, window_bounds = array<i64: 128, 256>}, {pipeline_mode = #tpu.pipeline_mode<synchronous>, transform_indices = @transform_2, window_bounds = array<i64: 128, 1>}, {pipeline_mode = #tpu.pipeline_mode<synchronous>, transform_indices = @transform_3, window_bounds = array<i64: 4096, 128>}, {pipeline_mode = #tpu.pipeline_mode<synchronous>, transform_indices = @transform_4, window_bounds = array<i64: 1, 128>}, {transform_indices = @transform_5, window_bounds = array<i64: 8, 128>}]} {
    %c0 = arith.constant 0 : index
    %c0_0 = arith.constant 0 : index
    %0 = vector.load %arg2[%c0, %c0_0] : memref<128x256xbf16, #tpu.memory_space<vmem>>, vector<128x256xbf16>
    %c0_1 = arith.constant 0 : index
    %c0_2 = arith.constant 0 : index
    %c0_3 = arith.constant 0 : index
    %1 = vector.load %arg1[%c0_1, %c0_2, %c0_3] : memref<1x256x256xbf16, #tpu.memory_space<vmem>>, vector<1x256x256xbf16>
    %2 = vector.shape_cast %1 : vector<1x256x256xbf16> to vector<256x256xbf16>
    %cst = arith.constant dense<0.000000e+00> : vector<128x256xf32>
    %3 = tpu.matmul %0, %2, %cst {dimension_numbers = #tpu.dot_dimension_numbers<[1], [0], [0], [1], [0, 0, 1, 1], [], []>} : vector<128x256xbf16>, vector<256x256xbf16>, vector<128x256xf32> -> vector<128x256xf32>
    %c0_4 = arith.constant 0 : index
    %c0_5 = arith.constant 0 : index
    %4 = vector.load %arg3[%c0_4, %c0_5] : memref<128x1xf32, #tpu.memory_space<vmem>>, vector<128x1xf32>
    %5 = vector.broadcast %4 : vector<128x1xf32> to vector<128x256xf32>
    %6 = arith.addf %3, %5 : vector<128x256xf32>
    %cst_6 = arith.constant 0.000000e+00 : f32
    %7 = vector.broadcast %cst_6 : f32 to vector<128x256xf32>
    %8 = arith.maximumf %6, %7 : vector<128x256xf32>
    %9 = vector.extract_strided_slice %8 {offsets = [0, 0], sizes = [8, 256], strides = [1, 1]} : vector<128x256xf32> to vector<8x256xf32>
    %c0_7 = arith.constant 0 : index
    %c0_8 = arith.constant 0 : index
    %10 = vector.load %arg7[%c0_7, %c0_8] : memref<8x4096xf32, #tpu.memory_space<vmem>>, vector<8x256xf32>
    tpu.vector_store %arg7[%c0_7, %c0_8], %9 {strides = array<i32>} : memref<8x4096xf32, #tpu.memory_space<vmem>>, vector<8x256xf32>,
    %11 = vector.extract_strided_slice %8 {offsets = [8, 0], sizes = [8, 256], strides = [1, 1]} : vector<128x256xf32> to vector<8x256xf32>
    %c0_9 = arith.constant 0 : index
    %c256 = arith.constant 256 : index
    %12 = vector.load %arg7[%c0_9, %c256] : memref<8x4096xf32, #tpu.memory_space<vmem>>, vector<8x256xf32>
    tpu.vector_store %arg7[%c0_9, %c256], %11 {strides = array<i32>} : memref<8x4096xf32, #tpu.memory_space<vmem>>, vector<8x256xf32>,
    %13 = vector.extract_strided_slice %8 {offsets = [16, 0], sizes = [8, 256], strides = [1, 1]} : vector<128x256xf32> to vector<8x256xf32>
    %c0_10 = arith.constant 0 : index
    %c512 = arith.constant 512 : index
    %14 = vector.load %arg7[%c0_10, %c512] : memref<8x4096xf32, #tpu.memory_space<vmem>>, vector<8x256xf32>
    tpu.vector_store %arg7[%c0_10, %c512], %13 {strides = array<i32>} : memref<8x4096xf32, #tpu.memory_space<vmem>>, vector<8x256xf32>,
    %15 = vector.extract_strided_slice %8 {offsets = [24, 0], sizes = [8, 256], strides = [1, 1]} : vector<128x256xf32> to vector<8x256xf32>
    %c0_11 = arith.constant 0 : index
    %c768 = arith.constant 768 : index
    %16 = vector.load %arg7[%c0_11, %c768] : memref<8x4096xf32, #tpu.memory_space<vmem>>, vector<8x256xf32>
    tpu.vector_store %arg7[%c0_11, %c768], %15 {strides = array<i32>} : memref<8x4096xf32, #tpu.memory_space<vmem>>, vector<8x256xf32>,
    %17 = vector.extract_strided_slice %8 {offsets = [32, 0], sizes = [8, 256], strides = [1, 1]} : vector<128x256xf32> to vector<8x256xf32>
    %c0_12 = arith.constant 0 : index
    %c1024 = arith.constant 1024 : index
    %18 = vector.load %arg7[%c0_12, %c1024] : memref<8x4096xf32, #tpu.memory_space<vmem>>, vector<8x256xf32>
    tpu.vector_store %arg7[%c0_12, %c1024], %17 {strides = array<i32>} : memref<8x4096xf32, #tpu.memory_space<vmem>>, vector<8x256xf32>,
    %19 = vector.extract_strided_slice %8 {offsets = [40, 0], sizes = [8, 256], strides = [1, 1]} : vector<128x256xf32> to vector<8x256xf32>
    %c0_13 = arith.constant 0 : index
    %c1280 = arith.constant 1280 : index
    %20 = vector.load %arg7[%c0_13, %c1280] : memref<8x4096xf32, #tpu.memory_space<vmem>>, vector<8x256xf32>
    tpu.vector_store %arg7[%c0_13, %c1280], %19 {strides = array<i32>} : memref<8x4096xf32, #tpu.memory_space<vmem>>, vector<8x256xf32>,
    %21 = vector.extract_strided_slice %8 {offsets = [48, 0], sizes = [8, 256], strides = [1, 1]} : vector<128x256xf32> to vector<8x256xf32>
    %c0_14 = arith.constant 0 : index
    %c1536 = arith.constant 1536 : index
    %22 = vector.load %arg7[%c0_14, %c1536] : memref<8x4096xf32, #tpu.memory_space<vmem>>, vector<8x256xf32>
    tpu.vector_store %arg7[%c0_14, %c1536], %21 {strides = array<i32>} : memref<8x4096xf32, #tpu.memory_space<vmem>>, vector<8x256xf32>,
    %23 = vector.extract_strided_slice %8 {offsets = [56, 0], sizes = [8, 256], strides = [1, 1]} : vector<128x256xf32> to vector<8x256xf32>
    %c0_15 = arith.constant 0 : index
    %c1792 = arith.constant 1792 : index
    %24 = vector.load %arg7[%c0_15, %c1792] : memref<8x4096xf32, #tpu.memory_space<vmem>>, vector<8x256xf32>
    tpu.vector_store %arg7[%c0_15, %c1792], %23 {strides = array<i32>} : memref<8x4096xf32, #tpu.memory_space<vmem>>, vector<8x256xf32>,
    %25 = vector.extract_strided_slice %8 {offsets = [64, 0], sizes = [8, 256], strides = [1, 1]} : vector<128x256xf32> to vector<8x256xf32>
    %c0_16 = arith.constant 0 : index
    %c2048 = arith.constant 2048 : index
    %26 = vector.load %arg7[%c0_16, %c2048] : memref<8x4096xf32, #tpu.memory_space<vmem>>, vector<8x256xf32>
    tpu.vector_store %arg7[%c0_16, %c2048], %25 {strides = array<i32>} : memref<8x4096xf32, #tpu.memory_space<vmem>>, vector<8x256xf32>,
    %27 = vector.extract_strided_slice %8 {offsets = [72, 0], sizes = [8, 256], strides = [1, 1]} : vector<128x256xf32> to vector<8x256xf32>
    %c0_17 = arith.constant 0 : index
    %c2304 = arith.constant 2304 : index
    %28 = vector.load %arg7[%c0_17, %c2304] : memref<8x4096xf32, #tpu.memory_space<vmem>>, vector<8x256xf32>
    tpu.vector_store %arg7[%c0_17, %c2304], %27 {strides = array<i32>} : memref<8x4096xf32, #tpu.memory_space<vmem>>, vector<8x256xf32>,
    %29 = vector.extract_strided_slice %8 {offsets = [80, 0], sizes = [8, 256], strides = [1, 1]} : vector<128x256xf32> to vector<8x256xf32>
    %c0_18 = arith.constant 0 : index
    %c2560 = arith.constant 2560 : index
    %30 = vector.load %arg7[%c0_18, %c2560] : memref<8x4096xf32, #tpu.memory_space<vmem>>, vector<8x256xf32>
    tpu.vector_store %arg7[%c0_18, %c2560], %29 {strides = array<i32>} : memref<8x4096xf32, #tpu.memory_space<vmem>>, vector<8x256xf32>,
    %31 = vector.extract_strided_slice %8 {offsets = [88, 0], sizes = [8, 256], strides = [1, 1]} : vector<128x256xf32> to vector<8x256xf32>
    %c0_19 = arith.constant 0 : index
    %c2816 = arith.constant 2816 : index
    %32 = vector.load %arg7[%c0_19, %c2816] : memref<8x4096xf32, #tpu.memory_space<vmem>>, vector<8x256xf32>
    tpu.vector_store %arg7[%c0_19, %c2816], %31 {strides = array<i32>} : memref<8x4096xf32, #tpu.memory_space<vmem>>, vector<8x256xf32>,
    %33 = vector.extract_strided_slice %8 {offsets = [96, 0], sizes = [8, 256], strides = [1, 1]} : vector<128x256xf32> to vector<8x256xf32>
    %c0_20 = arith.constant 0 : index
    %c3072 = arith.constant 3072 : index
    %34 = vector.load %arg7[%c0_20, %c3072] : memref<8x4096xf32, #tpu.memory_space<vmem>>, vector<8x256xf32>
    tpu.vector_store %arg7[%c0_20, %c3072], %33 {strides = array<i32>} : memref<8x4096xf32, #tpu.memory_space<vmem>>, vector<8x256xf32>,
    %35 = vector.extract_strided_slice %8 {offsets = [104, 0], sizes = [8, 256], strides = [1, 1]} : vector<128x256xf32> to vector<8x256xf32>
    %c0_21 = arith.constant 0 : index
    %c3328 = arith.constant 3328 : index
    %36 = vector.load %arg7[%c0_21, %c3328] : memref<8x4096xf32, #tpu.memory_space<vmem>>, vector<8x256xf32>
    tpu.vector_store %arg7[%c0_21, %c3328], %35 {strides = array<i32>} : memref<8x4096xf32, #tpu.memory_space<vmem>>, vector<8x256xf32>,
    %37 = vector.extract_strided_slice %8 {offsets = [112, 0], sizes = [8, 256], strides = [1, 1]} : vector<128x256xf32> to vector<8x256xf32>
    %c0_22 = arith.constant 0 : index
    %c3584 = arith.constant 3584 : index
    %38 = vector.load %arg7[%c0_22, %c3584] : memref<8x4096xf32, #tpu.memory_space<vmem>>, vector<8x256xf32>
    tpu.vector_store %arg7[%c0_22, %c3584], %37 {strides = array<i32>} : memref<8x4096xf32, #tpu.memory_space<vmem>>, vector<8x256xf32>,
    %39 = vector.extract_strided_slice %8 {offsets = [120, 0], sizes = [8, 256], strides = [1, 1]} : vector<128x256xf32> to vector<8x256xf32>
    %c0_23 = arith.constant 0 : index
    %c3840 = arith.constant 3840 : index
    %40 = vector.load %arg7[%c0_23, %c3840] : memref<8x4096xf32, #tpu.memory_space<vmem>>, vector<8x256xf32>
    tpu.vector_store %arg7[%c0_23, %c3840], %39 {strides = array<i32>} : memref<8x4096xf32, #tpu.memory_space<vmem>>, vector<8x256xf32>,
    %c0_24 = arith.constant 0 : index
    %c0_25 = arith.constant 0 : index
    %41 = vector.load %arg7[%c0_24, %c0_25] : memref<8x4096xf32, #tpu.memory_space<vmem>>, vector<8x4096xf32>
    %42 = arith.truncf %41 : vector<8x4096xf32> to vector<8x4096xbf16>
    %c0_26 = arith.constant 0 : index
    %c0_27 = arith.constant 0 : index
    %43 = vector.load %arg4[%c0_26, %c0_27] : memref<4096x128xbf16, #tpu.memory_space<vmem>>, vector<4096x128xbf16>
    %cst_28 = arith.constant dense<0.000000e+00> : vector<8x128xf32>
    %44 = tpu.matmul %42, %43, %cst_28 {dimension_numbers = #tpu.dot_dimension_numbers<[1], [0], [0], [1], [0, 0, 1, 1], [], []>} : vector<8x4096xbf16>, vector<4096x128xbf16>, vector<8x128xf32> -> vector<8x128xf32>
    %c0_29 = arith.constant 0 : index
    %c0_30 = arith.constant 0 : index
    %45 = vector.load %arg5[%c0_29, %c0_30] : memref<1x128xf32, #tpu.memory_space<vmem>>, vector<1x128xf32>
    %46 = vector.broadcast %45 : vector<1x128xf32> to vector<8x128xf32>
    %47 = arith.addf %44, %46 : vector<8x128xf32>
    %c0_31 = arith.constant 0 : index
    %c0_32 = arith.constant 0 : index
    %48 = vector.load %arg6[%c0_31, %c0_32] : memref<8x128xf32, #tpu.memory_space<vmem>>, vector<8x128xf32>
    tpu.vector_store %arg6[%c0_31, %c0_32], %47 {strides = array<i32>} : memref<8x128xf32, #tpu.memory_space<vmem>>, vector<8x128xf32>,
    return
  }
  func.func @transform_0(%arg0: i32) -> (i32, i32, i32) {
    %c0_i32 = arith.constant 0 : i32
    %c0_i32_0 = arith.constant 0 : i32
    %c0_i32_1 = arith.constant 0 : i32
    return %arg0, %c0_i32, %c0_i32_0 : i32, i32, i32
  }
  func.func @transform_1(%arg0: i32) -> (i32, i32) {
    %c0_i32 = arith.constant 0 : i32
    %c0_i32_0 = arith.constant 0 : i32
    %c0_i32_1 = arith.constant 0 : i32
    return %c0_i32, %c0_i32_0 : i32, i32
  }
  func.func @transform_2(%arg0: i32) -> (i32, i32) {
    %c0_i32 = arith.constant 0 : i32
    %c0_i32_0 = arith.constant 0 : i32
    %c0_i32_1 = arith.constant 0 : i32
    return %c0_i32, %c0_i32_0 : i32, i32
  }
  func.func @transform_3(%arg0: i32) -> (i32, i32) {
    %c0_i32 = arith.constant 0 : i32
    %c0_i32_0 = arith.constant 0 : i32
    %c0_i32_1 = arith.constant 0 : i32
    return %c0_i32, %c0_i32_0 : i32, i32
  }
  func.func @transform_4(%arg0: i32) -> (i32, i32) {
    %c0_i32 = arith.constant 0 : i32
    %c0_i32_0 = arith.constant 0 : i32
    %c0_i32_1 = arith.constant 0 : i32
    return %c0_i32, %c0_i32_0 : i32, i32
  }
  func.func @transform_5(%arg0: i32) -> (i32, i32) {
    %c0_i32 = arith.constant 0 : i32
    %c0_i32_0 = arith.constant 0 : i32
    return %arg0, %c0_i32 : i32, i32
  }
}

</mosaic_0001>

<bundles_post_ra>
// kernel: asl_translator_forward.1
= control target key start
LH: loop header
LB: loop body
LE: loop exit
PB: predicated region body
PF: predicated region fallthrough
CT: control target
= control target key end

     0   :  { %v4334_v1 = vmov 0   ;;  %s5442_s0 = inlined_call_operand.vmem [shape: bf16[1,256,256], index: 0, kind: input, shape index: {}]   ;;  %s5443_s1 = inlined_call_operand.vmem [shape: bf16[128,256], index: 1, kind: input, shape index: {}]   ;;  %s5444_s2 = inlined_call_operand.vmem [shape: f32[128,1], index: 2, kind: input, shape index: {}]   ;;  %s5445_s3 = inlined_call_operand.vmem [shape: bf16[4096,128], index: 3, kind: input, shape index: {}]   ;;  %s5446_s4 = inlined_call_operand.vmem [shape: f32[1,128], index: 4, kind: input, shape index: {}]   ;;  %s5447_s5 = inlined_call_operand.vmem [shape: f32[8,128], index: 5, kind: output, shape index: {}]  }
   0x1   :  { %v4006_v0 = vld [vmem:[%s5442_s0 + $0x74] ss:$8 sps:$4 sm:$0xff]   ;;  %4004 = vset.pattern.permute.xlu0 %v4334_v1  ;;  %4005 = vset.pattern.permute.xlu1 %v4334_v1  ;;  %v4008_v2 = vld [vmem:[%s5442_s0 + $0x70] ss:$8 sps:$4 sm:$0xff]   ;;  %v4009_v3 = vld [vmem:[%s5442_s0 + $0x64] ss:$8 sps:$4 sm:$0xff]  }
   0x2   :  { %405 = vmatprep.subr.bf16.mxu0 %v4006_v0  ;;  %v4011_v4 = vld [vmem:[%s5442_s0 + $0x60] ss:$8 sps:$4 sm:$0xff]   ;;  %v4012_v5 = vld [vmem:[%s5442_s0 + $0x54] ss:$8 sps:$4 sm:$0xff]   ;;  %v4014_v6 = vld [vmem:[%s5442_s0 + $0x50] ss:$8 sps:$4 sm:$0xff]  }
   0x3   :  { %406 = vmatpush1.bf16.msra.mxu0 %v4008_v2  ;;  %v4015_v7 = vld [vmem:[%s5442_s0 + $0x44] ss:$8 sps:$4 sm:$0xff]   ;;  %v4017_v8 = vld [vmem:[%s5442_s0 + $0x40] ss:$8 sps:$4 sm:$0xff]   ;;  %v4018_v9 = vld [vmem:[%s5442_s0 + $0x34] ss:$8 sps:$4 sm:$0xff]  }
   0x4   :  { %407 = vmatprep.subr.bf16.mxu0 %v4009_v3  ;;  %v4020_v10 = vld [vmem:[%s5442_s0 + $0x30] ss:$8 sps:$4 sm:$0xff]   ;;  %v4021_v11 = vld [vmem:[%s5442_s0 + $0x24] ss:$8 sps:$4 sm:$0xff]   ;;  %v4023_v12 = vld [vmem:[%s5442_s0 + $0x20] ss:$8 sps:$4 sm:$0xff]  }
   0x5   :  { %v4024_v13 = vld [vmem:[%s5442_s0 + $0x14] ss:$8 sps:$4 sm:$0xff]   ;;  %v4056_v14 = vld [vmem:[%s5443_s1 + $0x4] ss:$8 sps:$4 sm:$0xff]   ;;  %v4026_v15 = vld [vmem:[%s5442_s0 + $0x10] ss:$8 sps:$4 sm:$0xff]  }
   0x6   :  { %v4027_v16 = vld [vmem:[%s5442_s0 + $0x4] ss:$8 sps:$4 sm:$0xff]   ;;  %437 = vmatprep.mubr.bf16.mxu0 %v4056_v14  ;;  %v4029_v17 = vld [vmem:[%s5442_s0] ss:$8 sps:$4 sm:$0xff]   ;;  %v4030_v18 = vld [vmem:[%s5442_s0 + $0xf4] ss:$8 sps:$4 sm:$0xff]  }
   0x7   :  { %408 = vmatpush1.bf16.msra.mxu0 %v4011_v4  ;;  %v69_v19 = vld [vmem:[%s5444_s2] sm:$0xff]  ;;  %v4032_v20 = vld [vmem:[%s5442_s0 + $0xf0] ss:$8 sps:$4 sm:$0xff]   ;;  %v70_v21 = vld [vmem:[%s5444_s2 + $0x8] sm:$0xff] }
   0x8   :  { %409 = vmatprep.subr.bf16.mxu0 %v4012_v5  ;;  %87 = vperm.xlu0 %4004, %v69_v19   ;;  %v4033_v22 = vld [vmem:[%s5442_s0 + $0xe4] ss:$8 sps:$4 sm:$0xff]   ;;  %v71_v23 = vld [vmem:[%s5444_s2 + $0x10] sm:$0xff]  ;;  %v4035_v24 = vld [vmem:[%s5442_s0 + $0xe0] ss:$8 sps:$4 sm:$0xff]  }
   0x9   :  { %v73_v25 = vld [vmem:[%s5444_s2 + $0x20] sm:$0xff]  ;;  %97 = vperm.xlu1 %4005, %v71_v23   ;;  %v4036_v26 = vld [vmem:[%s5442_s0 + $0xd4] ss:$8 sps:$4 sm:$0xff]   ;;  %v4038_v28 = vld [vmem:[%s5442_s0 + $0xd0] ss:$8 sps:$4 sm:$0xff]  }
   0xa   :  { %v72_v27 = vld [vmem:[%s5444_s2 + $0x18] sm:$0xff]  ;;  %v75_v29 = vld [vmem:[%s5444_s2 + $0x30] sm:$0xff]  ;;  %v4039_v30 = vld [vmem:[%s5442_s0 + $0xc4] ss:$8 sps:$4 sm:$0xff]  }
   0xb   :  { %410 = vmatpush1.bf16.msra.mxu0 %v4014_v6  ;;  %v74_v31 = vld [vmem:[%s5444_s2 + $0x28] sm:$0xff]  ;;  %v4078_v32 = vld [vmem:[%s5445_s3 + $0x78] sm:$0xff]   ;;  %v4080_v34 = vld [vmem:[%s5445_s3 + $0x70] sm:$0xff]  }
   0xc   :  { %411 = vmatprep.subr.bf16.mxu0 %v4015_v7  ;;  %92 = vperm.xlu0 %4004, %v70_v21   ;;  %v4079_v33 = vld [vmem:[%s5445_s3 + $0x38] sm:$0xff]   ;;  %v4041_v35 = vld [vmem:[%s5442_s0 + $0xc0] ss:$8 sps:$4 sm:$0xff]   ;;  %v4081_v36 = vld [vmem:[%s5445_s3 + $0x30] sm:$0xff]  }
   0xd   :  { %102 = vperm.xlu1 %4005, %v72_v27   ;;  %3651 = vmatprep.subr.bf16.mxu1 %v4078_v32  ;;  %v4042_v37 = vld [vmem:[%s5442_s0 + $0xb4] ss:$8 sps:$4 sm:$0xff]   ;;  %v4082_v38 = vld [vmem:[%s5445_s3 + $0x68] sm:$0xff]   ;;  %v77_v39 = vld [vmem:[%s5444_s2 + $0x40] sm:$0xff] }
   0xe   :  { %3652 = vmatpush3.bf16.msra.mxu1 %v4079_v33  ;;  %v76_v40 = vld [vmem:[%s5444_s2 + $0x38] sm:$0xff]  ;;  %v4083_v42 = vld [vmem:[%s5445_s3 + $0x28] sm:$0xff]   ;;  %v4084_v44 = vld [vmem:[%s5445_s3 + $0x60] sm:$0xff]  }
   0xf   :  { %412 = vmatpush1.bf16.msra.mxu0 %v4017_v8  ;;  %3653 = vmatprep.subr.bf16.mxu1 %v4080_v34  ;;  %v4044_v41 = vld [vmem:[%s5442_s0 + $0xb0] ss:$8 sps:$4 sm:$0xff]   ;;  %v4045_v43 = vld [vmem:[%s5442_s0 + $0xa4] ss:$8 sps:$4 sm:$0xff]   ;;  %v4047_v47 = vld [vmem:[%s5442_s0 + $0xa0] ss:$8 sps:$4 sm:$0xff]  }
  0x10   :  { %413 = vmatprep.subr.bf16.mxu0 %v4018_v9  ;;  %107 = vperm.xlu0 %4004, %v73_v25   ;;  %v79_v45 = vld [vmem:[%s5444_s2 + $0x50] sm:$0xff]  ;;  %v78_v46 = vld [vmem:[%s5444_s2 + $0x48] sm:$0xff]  ;;  %v4086_v48 = vld [vmem:[%s5445_s3 + $0x20] sm:$0xff]  }
  0x11   :  { %112 = vperm.xlu1 %4005, %v74_v31   ;;  %v4048_v49 = vld [vmem:[%s5442_s0 + $0x94] ss:$8 sps:$4 sm:$0xff]   ;;  %v81_v51 = vld [vmem:[%s5444_s2 + $0x60] sm:$0xff]  ;;  %v4050_v53 = vld [vmem:[%s5442_s0 + $0x90] ss:$8 sps:$4 sm:$0xff]  }
  0x12   :  { %3654 = vmatpush3.bf16.msra.mxu1 %v4081_v36  ;;  %v4088_v50 = vld [vmem:[%s5445_s3 + $0x58] sm:$0xff]   ;;  %v83_v54 = vld [vmem:[%s5444_s2 + $0x70] sm:$0xff]  ;;  %v4051_v56 = vld [vmem:[%s5442_s0 + $0x84] ss:$8 sps:$4 sm:$0xff]  }
  0x13   :  { %414 = vmatpush1.bf16.msra.mxu0 %v4020_v10  ;;  %3655 = vmatprep.subr.bf16.mxu1 %v4082_v38  ;;  %v80_v52 = vld [vmem:[%s5444_s2 + $0x58] sm:$0xff]  ;;  %v82_v57 = vld [vmem:[%s5444_s2 + $0x68] sm:$0xff]  ;;  %v4092_v58 = vld [vmem:[%s5445_s3 + $0x50] sm:$0xff]  }
  0x14   :  { %415 = vmatprep.subr.bf16.mxu0 %v4021_v11  ;;  %117 = vperm.xlu0 %4004, %v75_v29   ;;  %v4090_v55 = vld [vmem:[%s5445_s3 + $0x18] sm:$0xff]   ;;  %v4094_v59 = vld [vmem:[%s5445_s3 + $0x10] sm:$0xff]   ;;  %v4053_v60 = vld [vmem:[%s5442_s0 + $0x80] ss:$8 sps:$4 sm:$0xff]  }
  0x15   :  { %122 = vperm.xlu1 %4005, %v76_v40   ;;  %v84_v61 = vld [vmem:[%s5444_s2 + $0x78] sm:$0xff]  ;;  %v4054_v63 = vld [vmem:[%s5443_s1] ss:$8 sps:$4 sm:$0xff]   ;;  %v4089_v2 = vld [vmem:[%s5445_s3 + $0x1f0] sm:$0xff]  }
  0x16   :  { %3656 = vmatpush3.bf16.msra.mxu1 %v4083_v42  ;;  %v4085_v62 = vld [vmem:[%s5445_s3 + $0x1f8] sm:$0xff]   ;;  %v4091_v3 = vld [vmem:[%s5445_s3 + $0x1b0] sm:$0xff]   ;;  %v4093_v4 = vld [vmem:[%s5445_s3 + $0x1e8] sm:$0xff]  }
  0x17   :  { %416 = vmatpush1.bf16.msra.mxu0 %v4023_v12  ;;  %3657 = vmatprep.subr.bf16.mxu1 %v4084_v44  ;;  %v4057_v0 = vld [vmem:[%s5443_s1 + $0x14] ss:$8 sps:$4 sm:$0xff]   ;;  %v4059_v5 = vld [vmem:[%s5443_s1 + $0x10] ss:$8 sps:$4 sm:$0xff]   ;;  %v4060_v6 = vld [vmem:[%s5443_s1 + $0x24] ss:$8 sps:$4 sm:$0xff]  }
  0x18   :  { %417 = vmatprep.subr.bf16.mxu0 %v4024_v13  ;;  %127 = vperm.xlu0 %4004, %v77_v39   ;;  %v4087_v1 = vld [vmem:[%s5445_s3 + $0x1b8] sm:$0xff]   ;;  %v4095_v7 = vld [vmem:[%s5445_s3 + $0x1a8] sm:$0xff]   ;;  %v4100_v23 = vld [vmem:[%s5445_s3 + $0x40] sm:$0xff]  }
  0x19   :  { %132 = vperm.xlu1 %4005, %v78_v46   ;;  %v4062_v8 = vld [vmem:[%s5443_s1 + $0x20] ss:$8 sps:$4 sm:$0xff]   ;;  %v4063_v9 = vld [vmem:[%s5443_s1 + $0x34] ss:$8 sps:$4 sm:$0xff]   ;;  %v4065_v10 = vld [vmem:[%s5443_s1 + $0x30] ss:$8 sps:$4 sm:$0xff]  }
  0x1a   :  { %3658 = vmatpush3.bf16.msra.mxu1 %v4086_v48  ;;  %v4066_v11 = vld [vmem:[%s5443_s1 + $0x44] ss:$8 sps:$4 sm:$0xff]   ;;  %v4068_v12 = vld [vmem:[%s5443_s1 + $0x40] ss:$8 sps:$4 sm:$0xff]   ;;  %v4069_v13 = vld [vmem:[%s5443_s1 + $0x54] ss:$8 sps:$4 sm:$0xff]  }
  0x1b   :  { %418 = vmatpush1.bf16.msra.mxu0 %v4026_v15  ;;  %3659 = vmatprep.subr.bf16.mxu1 %v4088_v50  ;;  %v4071_v14 = vld [vmem:[%s5443_s1 + $0x50] ss:$8 sps:$4 sm:$0xff]   ;;  %v4072_v15 = vld [vmem:[%s5443_s1 + $0x64] ss:$8 sps:$4 sm:$0xff]  }
  0x1c   :  { %419 = vmatprep.subr.bf16.mxu0 %v4027_v16  ;;  %137 = vperm.xlu0 %4004, %v79_v45   ;;  %v4074_v16 = vld [vmem:[%s5443_s1 + $0x60] ss:$8 sps:$4 sm:$0xff]   ;;  %v4104_v27 = vld [vmem:[%s5445_s3 + $0xf8] sm:$0xff]   ;;  %v4107_v29 = vld [vmem:[%s5445_s3 + $0x190] sm:$0xff]  }
  0x1d   :  { %142 = vperm.xlu1 %4005, %v80_v52   ;;  %v4096_v19 = vld [vmem:[%s5445_s3 + $0x48] sm:$0xff]   ;;  %v4102_v25 = vld [vmem:[%s5445_s3] sm:$0xff]   ;;  %v4117_v34 = vld [vmem:[%s5445_s3 + $0x2f8] sm:$0xff]  }
  0x1e   :  { %3660 = vmatpush3.bf16.msra.mxu1 %v4090_v55  ;;  %v4098_v21 = vld [vmem:[%s5445_s3 + $0x8] sm:$0xff]   ;;  %v4113_v32 = vld [vmem:[%s5445_s3 + $0x1c0] sm:$0xff]   ;;  %v4106_v48 = vld [vmem:[%s5445_s3 + $0xb8] sm:$0xff]  }
  0x1f   :  { %420 = vmatpush1.bf16.msra.mxu0 %v4029_v17  ;;  %3661 = vmatprep.subr.bf16.mxu1 %v4092_v58  ;;  %v4075_v17 = vld [vmem:[%s5443_s1 + $0x74] ss:$8 sps:$4 sm:$0xff]   ;;  %v4111_v31 = vld [vmem:[%s5445_s3 + $0x188] sm:$0xff]   ;;  %v4115_v33 = vld [vmem:[%s5445_s3 + $0x180] sm:$0xff]  }
  0x20   :  { %421 = vmatprep.subr.bf16.mxu0 %v4030_v18  ;;  %147 = vperm.xlu0 %4004, %v81_v51   ;;  %v4077_v18 = vld [vmem:[%s5443_s1 + $0x70] ss:$8 sps:$4 sm:$0xff]   ;;  %v4112_v58 = vld [vmem:[%s5445_s3 + $0xe8] sm:$0xff]  }
  0x21   :  { %152 = vperm.xlu1 %4005, %v82_v57   ;;  %v4108_v51 = vld [vmem:[%s5445_s3 + $0xf0] sm:$0xff]  }
  0x22   :  { %3662 = vmatpush3.bf16.msra.mxu1 %v4094_v59 }
  0x23   :  { %422 = vmatpush2.bf16.msra.mxu0 %v4032_v20  ;;  %v4097_v20 = vld [vmem:[%s5445_s3 + $0x1e0] sm:$0xff]   ;;  %3663 = vmatprep.subr.bf16.mxu1 %v4096_v19  ;;  %v4126_v19 = vld [vmem:[%s5445_s3 + $0x90] sm:$0xff]  }
  0x24   :  { %423 = vmatprep.subr.bf16.mxu0 %v4033_v22  ;;  %157 = vperm.xlu0 %4004, %v83_v54   ;;  %v4099_v22 = vld [vmem:[%s5445_s3 + $0x1a0] sm:$0xff]  }
  0x25   :  { %162 = vperm.xlu1 %4005, %v84_v61  }
  0x26   :  { %3664 = vmatpush3.bf16.msra.mxu1 %v4098_v21 }
  0x27   :  { %424 = vmatpush2.bf16.msra.mxu0 %v4035_v24  ;;  %v4101_v24 = vld [vmem:[%s5445_s3 + $0x1d8] sm:$0xff]   ;;  %3665 = vmatprep.subr.bf16.mxu1 %v4100_v23  ;;  %v4129_v23 = vld [vmem:[%s5445_s3 + $0x2e0] sm:$0xff]  }
  0x28   :  { %425 = vmatprep.subr.bf16.mxu0 %v4036_v26  ;;  %v4103_v26 = vld [vmem:[%s5445_s3 + $0x198] sm:$0xff]  }
  0x2a   :  { %3666 = vmatpush3.bf16.msra.mxu1 %v4102_v25  ;;  %v4131_v25 = vld [vmem:[%s5445_s3 + $0x2a0] sm:$0xff]  }
  0x2b   :  { %426 = vmatpush2.bf16.msra.mxu0 %v4038_v28  ;;  %v4105_v28 = vld [vmem:[%s5445_s3 + $0x1d0] sm:$0xff]   ;;  %3673 = vmatprep.subr.bf16.mxu1 %v4104_v27 }
  0x2c   :  { %427 = vmatprep.subr.bf16.mxu0 %v4039_v30  ;;  %v4109_v30 = vld [vmem:[%s5445_s3 + $0x1c8] sm:$0xff]  }
  0x2f   :  { %428 = vmatpush2.bf16.msra.mxu0 %v4041_v35 }
  0x30   :  { %429 = vmatprep.subr.bf16.mxu0 %v4042_v37 }
  0x33   :  { %430 = vmatpush2.bf16.msra.mxu0 %v4044_v41 }
  0x34   :  { %431 = vmatprep.subr.bf16.mxu0 %v4045_v43 }
  0x37   :  { %432 = vmatpush2.bf16.msra.mxu0 %v4047_v47 }
  0x38   :  { %433 = vmatprep.subr.bf16.mxu0 %v4048_v49 }
  0x3b   :  { %434 = vmatpush2.bf16.msra.mxu0 %v4050_v53 }
  0x3c   :  { %435 = vmatprep.subr.bf16.mxu0 %v4051_v56  ;;  %v4110_v56 = vld [vmem:[%s5445_s3 + $0xb0] sm:$0xff]  }
  0x3f   :  { %436 = vmatpush2.bf16.msra.mxu0 %v4053_v60 }
  0x40   :  { %3717 = vmatprep.subr.bf16.mxu0 %v4085_v62 }
  0x42   :  { %438 = vmatmul.mubr.bf16.vlgmr.msra.gmra.mxu0 %v4054_v63  ;;  %v4114_v63 = vld [vmem:[%s5445_s3 + $0xa8] sm:$0xff]  }
  0x43   :  { %447 = vmatprep.mubr.bf16.mxu0 %v4057_v0  ;;  %3718 = vmatpush3.bf16.msra.mxu0 %v4087_v1  ;;  %v4116_v1 = vld [vmem:[%s5445_s3 + $0xe0] sm:$0xff]  }
  0x44   :  { %3719 = vmatprep.subr.bf16.mxu0 %v4089_v2 }
  0x47   :  { %3720 = vmatpush3.bf16.msra.mxu0 %v4091_v3 }
  0x48   :  { %3721 = vmatprep.subr.bf16.mxu0 %v4093_v4 }
  0x4a   :  { %448 = vmatmul.mubr.bf16.gmra.mxu0 %v4059_v5 }
  0x4b   :  { %457 = vmatprep.mubr.bf16.mxu0 %v4060_v6  ;;  %3722 = vmatpush3.bf16.msra.mxu0 %v4095_v7  ;;  %v4118_v6 = vld [vmem:[%s5445_s3 + $0xa0] sm:$0xff]   ;;  %v4119_v7 = vld [vmem:[%s5445_s3 + $0x2b8] sm:$0xff]  }
  0x4c   :  { %3723 = vmatprep.subr.bf16.mxu0 %v4097_v20  ;;  %v4127_v20 = vld [vmem:[%s5445_s3 + $0x2a8] sm:$0xff]  }
  0x4f   :  { %3724 = vmatpush3.bf16.msra.mxu0 %v4099_v22  ;;  %v4128_v22 = vld [vmem:[%s5445_s3 + $0xc8] sm:$0xff]  }
  0x50   :  { %3725 = vmatprep.subr.bf16.mxu0 %v4101_v24  ;;  %v4130_v24 = vld [vmem:[%s5445_s3 + $0x88] sm:$0xff]  }
  0x52   :  { %458 = vmatmul.mubr.bf16.gmra.mxu0 %v4062_v8 }
  0x53   :  { %467 = vmatprep.mubr.bf16.mxu0 %v4063_v9  ;;  %3726 = vmatpush3.bf16.msra.mxu0 %v4103_v26  ;;  %v4120_v9 = vld [vmem:[%s5445_s3 + $0xd8] sm:$0xff]  }
  0x54   :  { %3727 = vmatprep.subr.bf16.mxu0 %v4105_v28  ;;  %v4132_v28 = vld [vmem:[%s5445_s3 + $0xc0] sm:$0xff]  }
  0x57   :  { %3728 = vmatpush3.bf16.msra.mxu0 %v4107_v29  ;;  %v4133_v29 = vld [vmem:[%s5445_s3 + $0x2d8] sm:$0xff]  }
  0x58   :  { %3729 = vmatprep.subr.bf16.mxu0 %v4109_v30 }
  0x5a   :  { %468 = vmatmul.mubr.bf16.gmra.mxu0 %v4065_v10  ;;  %v4121_v10 = vld [vmem:[%s5445_s3 + $0x2f0] sm:$0xff]  }
  0x5b   :  { %477 = vmatprep.mubr.bf16.mxu0 %v4066_v11  ;;  %3730 = vmatpush3.bf16.msra.mxu0 %v4111_v31  ;;  %v4134_v31 = vld [vmem:[%s5445_s3 + $0x80] sm:$0xff]  }
  0x5c   :  { %3731 = vmatprep.subr.bf16.mxu0 %v4113_v32  ;;  %v4135_v32 = vld [vmem:[%s5445_s3 + $0x298] sm:$0xff]  }
  0x5f   :  { %3732 = vmatpush3.bf16.msra.mxu0 %v4115_v33 }
  0x60   :  { %3761 = vmatprep.subr.bf16.mxu0 %v4117_v34 }
  0x62   :  { %478 = vmatmul.mubr.bf16.gmra.mxu0 %v4068_v12 }
  0x63   :  { %487 = vmatprep.mubr.bf16.mxu0 %v4069_v13  ;;  %v4122_v13 = vld [vmem:[%s5445_s3 + $0x98] sm:$0xff]  }
  0x6a   :  { %488 = vmatmul.mubr.bf16.gmra.mxu0 %v4071_v14  ;;  %v4123_v14 = vld [vmem:[%s5445_s3 + $0x2b0] sm:$0xff]  }
  0x6b   :  { %497 = vmatprep.mubr.bf16.mxu0 %v4072_v15 }
  0x72   :  { %498 = vmatmul.mubr.bf16.gmra.mxu0 %v4074_v16  ;;  %v4124_v16 = vld [vmem:[%s5445_s3 + $0xd0] sm:$0xff]  }
  0x73   :  { %507 = vmatprep.mubr.bf16.mxu0 %v4075_v17  ;;  %v4125_v17 = vld [vmem:[%s5445_s3 + $0x2e8] sm:$0xff]  }
  0x7a   :  { %508 = vmatmul.mubr.bf16.gmra.mxu0 %v4077_v18 }
  0x83   :  { %v88_v35 = vpop.permute.xlu0 %87 }
  0x84   :  { %v4661_v42 = vpop.permute.xlu1 %97 }
  0x87   :  { %v4663_v44 = vpop.permute.xlu0 %92 }
  0x88   :  { %v103_v54 = vpop.permute.xlu1 %102 }
  0x8c   :  { %v113_v12 = vpop.permute.xlu1 %112 }
 0x102   :  { %v439_v36 = vpop.f32.mrf.mxu0 }
 0x103   :  { %v440_v37 = vadd.f32 %v439_v36, %v88_v35  ;;  %v4137_v36 = vld [vmem:[%s5445_s3 + $0x2d0] sm:$0xff]  }
 0x104   :  { %v441_v38 = vpop.f32.mrf.mxu0 }
 0x105   :  { %v442_v39 = vadd.f32 %v441_v38, %v88_v35  ;;  %v518_v40 = vmax.f32 %v440_v37, 0.0  ;;  %v4136_v35 = vld [vmem:[%s5445_s3 + $0x178] sm:$0xff]  }
 0x106   :  { %v4659_v41 = vpop.f32.mrf.mxu0  ;;  %v4138_v38 = vld [vmem:[%s5445_s3 + $0x138] sm:$0xff]  }
 0x107   :  { %v519_v43 = vmax.f32 %v442_v39, 0.0  ;;  %v614_v49 = vpack.c.bf16 %v518_v40, %v518_v40  ;;  %v444_v26 = vadd.f32 %v4659_v41, %v4663_v44  ;;  %v4139_v39 = vld [vmem:[%s5445_s3 + $0x290] sm:$0xff]  }
 0x108   :  { %v445_v45 = vpop.f32.mrf.mxu0 }
 0x109   :  { %v446_v46 = vadd.f32 %v445_v45, %v4663_v44  ;;  %v615_v47 = vpack.c.bf16 %v519_v43, %v519_v43  ;;  %v520_v33 = vmax.f32 %v444_v26, 0.0  ;;  %v4140_v43 = vld [vmem:[%s5445_s3 + $0x170] sm:$0xff]   ;;  %v4141_v44 = vld [vmem:[%s5445_s3 + $0x2c8] sm:$0xff]  }
 0x10a   :  { %v4669_v50 = vpop.f32.mrf.mxu0 }
 0x10b   :  { %v521_v52 = vmax.f32 %v446_v46, 0.0  ;;  %2733 = vmatprep.mubr.bf16.mxu1 %v615_v47  ;;  %v616_v40 = vpack.c.bf16 %v520_v33, %v520_v33  ;;  %v4142_v47 = vld [vmem:[%s5445_s3 + $0x130] sm:$0xff]  }
 0x10c   :  { %v4674_v53 = vpop.f32.mrf.mxu0  ;;  %2734 = vmatmul.mubr.bf16.vlgmr.msra.gmra.mxu1 %v614_v49  ;;  %v4174_v33 = vld [vmem:[%s5445_s3 + $0x230] sm:$0xff]  }
 0x10d   :  { %v617_v55 = vpack.c.bf16 %v521_v52, %v521_v52  ;;  %3674 = vmatpush3.bf16.msra.mxu1 %v4106_v48  ;;  %v452_v30 = vadd.f32 %v4674_v53, %v4661_v42  ;;  %v4143_v48 = vld [vmem:[%s5445_s3 + $0x288] sm:$0xff]   ;;  %v4145_v53 = vld [vmem:[%s5445_s3 + $0x2c0] sm:$0xff]  }
 0x10e   :  { %v453_v57 = vpop.f32.mrf.mxu0  ;;  %3675 = vmatprep.subr.bf16.mxu1 %v4108_v51  ;;  %v4780_v51 = vpop.permute.xlu1 %122  ;;  %v4144_v52 = vld [vmem:[%s5445_s3 + $0x168] sm:$0xff]  }
 0x10f   :  { %2773 = vmatprep.mubr.bf16.mxu1 %v617_v55  ;;  %v454_v59 = vadd.f32 %v453_v57, %v103_v54  ;;  %v523_v37 = vmax.f32 %v452_v30, 0.0  ;;  %v4147_v57 = vld [vmem:[%s5445_s3 + $0x280] sm:$0xff]  }
 0x110   :  { %v455_v60 = vpop.f32.mrf.mxu0 }
 0x111   :  { %v524_v61 = vmax.f32 %v454_v59, 0.0  ;;  %v456_v62 = vadd.f32 %v455_v60, %v103_v54  ;;  %3676 = vmatpush3.bf16.msra.mxu1 %v4110_v56  ;;  %v619_v45 = vpack.c.bf16 %v523_v37, %v523_v37  ;;  %v4146_v56 = vld [vmem:[%s5445_s3 + $0x128] sm:$0xff]   ;;  %v4149_v59 = vld [vmem:[%s5445_s3 + $0x3f8] sm:$0xff]  }
 0x112   :  { %v4685_v0 = vpop.f32.mrf.mxu0  ;;  %3677 = vmatprep.subr.bf16.mxu1 %v4112_v58  ;;  %v4148_v58 = vld [vmem:[%s5445_s3 + $0x160] sm:$0xff]  }
 0x113   :  { %v525_v2 = vmax.f32 %v456_v62, 0.0  ;;  %v620_v3 = vpack.c.bf16 %v524_v61, %v524_v61  ;;  %v4150_v62 = vld [vmem:[%s5445_s3 + $0x120] sm:$0xff]  }
 0x114   :  { %v4690_v4 = vpop.f32.mrf.mxu0 }
 0x115   :  { %v621_v5 = vpack.c.bf16 %v525_v2, %v525_v2  ;;  %3678 = vmatpush3.bf16.msra.mxu1 %v4114_v63  ;;  %v4151_v63 = vld [vmem:[%s5445_s3 + $0x3b8] sm:$0xff]   ;;  %v4153_v2 = vld [vmem:[%s5445_s3 + $0x3f0] sm:$0xff]  }
 0x116   :  { %v463_v8 = vpop.f32.mrf.mxu0  ;;  %3679 = vmatprep.subr.bf16.mxu1 %v4116_v1  ;;  %v4152_v1 = vld [vmem:[%s5445_s3 + $0x158] sm:$0xff]  }
 0x117   :  { %2853 = vmatprep.mubr.bf16.mxu0 %v621_v5  ;;  %v464_v46 = vadd.f32 %v463_v8, %v113_v12  ;;  %v4154_v5 = vld [vmem:[%s5445_s3 + $0x118] sm:$0xff]   ;;  %v4157_v8 = vld [vmem:[%s5445_s3 + $0x3e8] sm:$0xff]  }
 0x118   :  { %v465_v11 = vpop.f32.mrf.mxu0  ;;  %2854 = vmatmul.mubr.bf16.vlgmr.msra.gmra.mxu0 %v620_v3 }
 0x119   :  { %3680 = vmatpush3.bf16.msra.mxu1 %v4118_v6  ;;  %3762 = vmatpush3.bf16.msra.mxu0 %v4119_v7  ;;  %v466_v15 = vadd.f32 %v465_v11, %v113_v12  ;;  %v528_v55 = vmax.f32 %v464_v46, 0.0  ;;  %v4155_v6 = vld [vmem:[%s5445_s3 + $0x3b0] sm:$0xff]   ;;  %v4160_v11 = vld [vmem:[%s5445_s3 + $0x148] sm:$0xff]   ;;  %v4161_v12 = vld [vmem:[%s5445_s3 + $0x3e0] sm:$0xff]  }
 0x11a   :  { %3681 = vmatprep.subr.bf16.mxu1 %v4120_v9  ;;  %3763 = vmatprep.subr.bf16.mxu0 %v4121_v10  ;;  %v4736_v27 = vpop.f32.mrf.mxu0  ;;  %v4156_v7 = vld [vmem:[%s5445_s3 + $0x150] sm:$0xff]   ;;  %v4159_v10 = vld [vmem:[%s5445_s3 + $0x3a8] sm:$0xff]  }
 0x11b   :  { %v529_v18 = vmax.f32 %v466_v15, 0.0  ;;  %v624_v61 = vpack.c.bf16 %v528_v55, %v528_v55  ;;  %v4158_v9 = vld [vmem:[%s5445_s3 + $0x110] sm:$0xff]   ;;  %v4843_v15 = vpop.permute.xlu0 %107 }
 0x11c   :  { %v4752_v34 = vpop.f32.mrf.mxu0 }
 0x11d   :  { %3682 = vmatpush3.bf16.msra.mxu1 %v4122_v13  ;;  %3764 = vmatpush3.bf16.msra.mxu0 %v4123_v14  ;;  %v625_v21 = vpack.c.bf16 %v529_v18, %v529_v18  ;;  %v4162_v13 = vld [vmem:[%s5445_s3 + $0x108] sm:$0xff]   ;;  %v4163_v14 = vld [vmem:[%s5445_s3 + $0x3a0] sm:$0xff]   ;;  %v4165_v18 = vld [vmem:[%s5445_s3 + $0x3d8] sm:$0xff]  }
 0x11e   :  { %3683 = vmatprep.subr.bf16.mxu1 %v4124_v16  ;;  %3765 = vmatprep.subr.bf16.mxu0 %v4125_v17  ;;  %v4766_v41 = vpop.f32.mrf.mxu0  ;;  %v450_v16 = vadd.f32 %v4669_v50, %v4661_v42  ;;  %v4164_v17 = vld [vmem:[%s5445_s3 + $0x140] sm:$0xff]   ;;  %v4167_v50 = vld [vmem:[%s5445_s3 + $0x398] sm:$0xff]  }
 0x11f   :  { %2933 = vmatprep.mubr.bf16.mxu0 %v625_v21  ;;  %v4166_v42 = vld [vmem:[%s5445_s3 + $0x100] sm:$0xff]  }
 0x120   :  { %v475_v49 = vpop.f32.mrf.mxu0  ;;  %v522_v21 = vmax.f32 %v450_v16, 0.0 }
 0x121   :  { %3684 = vmatpush3.bf16.msra.mxu1 %v4126_v19  ;;  %3766 = vmatpush3.bf16.msra.mxu0 %v4127_v20  ;;  %v476_v54 = vadd.f32 %v475_v49, %v4780_v51  ;;  %v462_v19 = vadd.f32 %v4690_v4, %v4843_v15  ;;  %v4169_v4 = vld [vmem:[%s5445_s3 + $0x3d0] sm:$0xff]   ;;  %v4182_v49 = vld [vmem:[%s5445_s3 + $0x220] sm:$0xff]  }
 0x122   :  { %3685 = vmatprep.subr.bf16.mxu1 %v4128_v22  ;;  %3767 = vmatprep.subr.bf16.mxu0 %v4129_v23  ;;  %v4855_v20 = vpop.f32.mrf.mxu0  ;;  %v4168_v22 = vld [vmem:[%s5445_s3 + $0x278] sm:$0xff]   ;;  %v618_v26 = vpack.c.bf16 %v522_v21, %v522_v21  ;;  %v4206_v21 = vld [vmem:[%s5445_s3 + $0x330] sm:$0xff]  }
 0x123   :  { %v533_v60 = vmax.f32 %v476_v54, 0.0  ;;  %v527_v23 = vmax.f32 %v462_v19, 0.0  ;;  %v4185_v54 = vld [vmem:[%s5445_s3 + $0x4f0] sm:$0xff]  }
 0x125   :  { %3686 = vmatpush3.bf16.msra.mxu1 %v4130_v24  ;;  %3768 = vmatpush3.bf16.msra.mxu0 %v4131_v25  ;;  %v629_v3 = vpack.c.bf16 %v533_v60, %v533_v60  ;;  %v4869_v24 = vpop.f32.mrf.mxu0  ;;  %v4170_v25 = vld [vmem:[%s5445_s3 + $0x238] sm:$0xff]   ;;  %v623_v30 = vpack.c.bf16 %v527_v23, %v527_v23  ;;  %v4190_v60 = vld [vmem:[%s5445_s3 + $0x210] sm:$0xff]  }
 0x126   :  { %3687 = vmatprep.subr.bf16.mxu1 %v4132_v28  ;;  %3769 = vmatprep.subr.bf16.mxu0 %v4133_v29  ;;  %v4171_v28 = vld [vmem:[%s5445_s3 + $0x390] sm:$0xff]  }
 0x127   :  { %v4172_v29 = vld [vmem:[%s5445_s3 + $0x270] sm:$0xff]  }
 0x129   :  { %3688 = vmatpush3.bf16.msra.mxu1 %v4134_v31  ;;  %3770 = vmatpush3.bf16.msra.mxu0 %v4135_v32  ;;  %v4880_v31 = vpop.f32.mrf.mxu0  ;;  %v4173_v32 = vld [vmem:[%s5445_s3 + $0x3c8] sm:$0xff]  }
 0x12a   :  { %3695 = vmatprep.subr.bf16.mxu1 %v4136_v35  ;;  %3771 = vmatprep.subr.bf16.mxu0 %v4137_v36  ;;  %v4175_v35 = vld [vmem:[%s5445_s3 + $0x388] sm:$0xff]  }
 0x12b   :  { %v4176_v36 = vld [vmem:[%s5445_s3 + $0x268] sm:$0xff]   ;;  %v485_v37 = vpop.f32.mrf.mxu0 }
 0x12c   :  { %2774 = vmatmul.mubr.bf16.vlgmr.msra.gmra.mxu1 %v616_v40  ;;  %v4177_v40 = vld [vmem:[%s5445_s3 + $0x3c0] sm:$0xff]  }
 0x12d   :  { %3696 = vmatpush3.bf16.msra.mxu1 %v4138_v38  ;;  %3772 = vmatpush3.bf16.msra.mxu0 %v4139_v39  ;;  %v474_v38 = vadd.f32 %v4766_v41, %v4780_v51  ;;  %v4896_v39 = vpop.permute.xlu1 %132  ;;  %v4179_v41 = vld [vmem:[%s5445_s3 + $0x380] sm:$0xff]   ;;  %v4183_v51 = vld [vmem:[%s5445_s3 + $0x4b8] sm:$0xff]  }
 0x12e   :  { %3697 = vmatprep.subr.bf16.mxu1 %v4140_v43  ;;  %3773 = vmatprep.subr.bf16.mxu0 %v4141_v44  ;;  %v486_v43 = vadd.f32 %v485_v37, %v4896_v39  ;;  %v4178_v44 = vld [vmem:[%s5445_s3 + $0x228] sm:$0xff]   ;;  %v4214_v37 = vld [vmem:[%s5445_s3 + $0x320] sm:$0xff]  }
 0x12f   :  { %2813 = vmatprep.mubr.bf16.mxu1 %v619_v45  ;;  %v4180_v45 = vld [vmem:[%s5445_s3 + $0x260] sm:$0xff]   ;;  %v532_v46 = vmax.f32 %v474_v38, 0.0  ;;  %v4215_v38 = vld [vmem:[%s5445_s3 + $0x5b8] sm:$0xff]  }
 0x131   :  { %3698 = vmatpush3.bf16.msra.mxu1 %v4142_v47  ;;  %3774 = vmatpush3.bf16.msra.mxu0 %v4143_v48  ;;  %v4181_v47 = vld [vmem:[%s5445_s3 + $0x4f8] sm:$0xff]   ;;  %v537_v48 = vmax.f32 %v486_v43, 0.0  ;;  %v4217_v43 = vld [vmem:[%s5445_s3 + $0x5f0] sm:$0xff]  }
 0x132   :  { %3699 = vmatprep.subr.bf16.mxu1 %v4144_v52  ;;  %3775 = vmatprep.subr.bf16.mxu0 %v4145_v53  ;;  %v628_v52 = vpack.c.bf16 %v532_v46, %v532_v46  ;;  %v4184_v53 = vld [vmem:[%s5445_s3 + $0x258] sm:$0xff]   ;;  %v4220_v46 = vld [vmem:[%s5445_s3 + $0x350] sm:$0xff]  }
 0x133   :  { %v633_v55 = vpack.c.bf16 %v537_v48, %v537_v48  ;;  %v4222_v48 = vld [vmem:[%s5445_s3 + $0x310] sm:$0xff]  }
 0x135   :  { %3700 = vmatpush3.bf16.msra.mxu1 %v4146_v56  ;;  %3776 = vmatpush3.bf16.msra.mxu0 %v4147_v57  ;;  %v4186_v56 = vld [vmem:[%s5445_s3 + $0x218] sm:$0xff]   ;;  %v4187_v57 = vld [vmem:[%s5445_s3 + $0x4b0] sm:$0xff]  }
 0x136   :  { %3701 = vmatprep.subr.bf16.mxu1 %v4148_v58  ;;  %3805 = vmatprep.subr.bf16.mxu0 %v4149_v59  ;;  %v4188_v58 = vld [vmem:[%s5445_s3 + $0x250] sm:$0xff]   ;;  %v4189_v59 = vld [vmem:[%s5445_s3 + $0x4e8] sm:$0xff]  }
 0x138   :  { %2934 = vmatmul.mubr.bf16.vlgmr.msra.gmra.mxu0 %v624_v61  ;;  %v4191_v61 = vld [vmem:[%s5445_s3 + $0x4a8] sm:$0xff]  }
 0x139   :  { %3702 = vmatpush3.bf16.msra.mxu1 %v4150_v62  ;;  %3806 = vmatpush3.bf16.msra.mxu0 %v4151_v63  ;;  %v4192_v62 = vld [vmem:[%s5445_s3 + $0x248] sm:$0xff]   ;;  %v4193_v63 = vld [vmem:[%s5445_s3 + $0x4e0] sm:$0xff]  }
 0x13a   :  { %3703 = vmatprep.subr.bf16.mxu1 %v4152_v1  ;;  %3807 = vmatprep.subr.bf16.mxu0 %v4153_v2  ;;  %v4194_v1 = vld [vmem:[%s5445_s3 + $0x208] sm:$0xff]   ;;  %v4953_v2 = vpop.permute.xlu0 %117 }
 0x13b   :  { %3013 = vmatprep.mubr.bf16.mxu0 %v629_v3  ;;  %v460_v3 = vadd.f32 %v4685_v0, %v4843_v15  ;;  %v4197_v0 = vld [vmem:[%s5445_s3 + $0x4d8] sm:$0xff]  }
 0x13c   :  { %v4202_v15 = vld [vmem:[%s5445_s3 + $0x338] sm:$0xff]  }
 0x13d   :  { %3704 = vmatpush3.bf16.msra.mxu1 %v4154_v5  ;;  %3808 = vmatpush3.bf16.msra.mxu0 %v4155_v6  ;;  %v4195_v5 = vld [vmem:[%s5445_s3 + $0x4a0] sm:$0xff]  }
 0x13e   :  { %3705 = vmatprep.subr.bf16.mxu1 %v4156_v7  ;;  %3809 = vmatprep.subr.bf16.mxu0 %v4157_v8  ;;  %v4196_v6 = vld [vmem:[%s5445_s3 + $0x240] sm:$0xff]   ;;  %v472_v7 = vadd.f32 %v4752_v34, %v4953_v2  ;;  %v4965_v8 = vpop.f32.mrf.mxu0  ;;  %v4200_v34 = vld [vmem:[%s5445_s3 + $0x378] sm:$0xff]  }
 0x141   :  { %3706 = vmatpush3.bf16.msra.mxu1 %v4158_v9  ;;  %3810 = vmatpush3.bf16.msra.mxu0 %v4159_v10  ;;  %v4198_v9 = vld [vmem:[%s5445_s3 + $0x200] sm:$0xff]   ;;  %v526_v10 = vmax.f32 %v460_v3, 0.0  ;;  %v4234_v3 = vld [vmem:[%s5445_s3 + $0x438] sm:$0xff]  }
 0x142   :  { %3707 = vmatprep.subr.bf16.mxu1 %v4160_v11  ;;  %3811 = vmatprep.subr.bf16.mxu0 %v4161_v12  ;;  %v4199_v11 = vld [vmem:[%s5445_s3 + $0x498] sm:$0xff]   ;;  %v531_v12 = vmax.f32 %v472_v7, 0.0  ;;  %v4236_v7 = vld [vmem:[%s5445_s3 + $0x470] sm:$0xff]  }
 0x143   :  { %v622_v16 = vpack.c.bf16 %v526_v10, %v526_v10  ;;  %v4237_v10 = vld [vmem:[%s5445_s3 + $0x5c8] sm:$0xff]  }
 0x144   :  { %v627_v19 = vpack.c.bf16 %v531_v12, %v531_v12  ;;  %v4240_v12 = vld [vmem:[%s5445_s3 + $0x468] sm:$0xff]  }
 0x145   :  { %3708 = vmatpush3.bf16.msra.mxu1 %v4162_v13  ;;  %3812 = vmatpush3.bf16.msra.mxu0 %v4163_v14  ;;  %v4979_v13 = vpop.f32.mrf.mxu0  ;;  %v4201_v14 = vld [vmem:[%s5445_s3 + $0x4d0] sm:$0xff]  }
 0x146   :  { %3709 = vmatprep.subr.bf16.mxu1 %v4164_v17  ;;  %3813 = vmatprep.subr.bf16.mxu0 %v4165_v18  ;;  %v4203_v17 = vld [vmem:[%s5445_s3 + $0x490] sm:$0xff]  }
 0x147   :  { %v4204_v18 = vld [vmem:[%s5445_s3 + $0x370] sm:$0xff]  }
 0x149   :  { %3710 = vmatpush3.bf16.msra.mxu1 %v4166_v42  ;;  %3814 = vmatpush3.bf16.msra.mxu0 %v4167_v50  ;;  %v4993_v42 = vpop.f32.mrf.mxu0  ;;  %v4205_v50 = vld [vmem:[%s5445_s3 + $0x4c8] sm:$0xff]  }
 0x14a   :  { %3739 = vmatprep.subr.bf16.mxu1 %v4168_v22  ;;  %3815 = vmatprep.subr.bf16.mxu0 %v4169_v4  ;;  %v4207_v22 = vld [vmem:[%s5445_s3 + $0x488] sm:$0xff]  }
 0x14b   :  { %v4208_v4 = vld [vmem:[%s5445_s3 + $0x368] sm:$0xff]   ;;  %v495_v23 = vpop.f32.mrf.mxu0 }
 0x14c   :  { %2814 = vmatmul.mubr.bf16.vlgmr.msra.gmra.mxu1 %v618_v26  ;;  %v5009_v26 = vpop.permute.xlu1 %142 }
 0x14d   :  { %3740 = vmatpush3.bf16.msra.mxu1 %v4170_v25  ;;  %2893 = vmatprep.mubr.bf16.mxu1 %v623_v30  ;;  %v484_v25 = vadd.f32 %v4880_v31, %v4896_v39  ;;  %v4210_v30 = vld [vmem:[%s5445_s3 + $0x328] sm:$0xff]   ;;  %v4211_v31 = vld [vmem:[%s5445_s3 + $0x480] sm:$0xff]  }
 0x14e   :  { %3816 = vmatpush3.bf16.msra.mxu0 %v4171_v28  ;;  %3741 = vmatprep.subr.bf16.mxu1 %v4172_v29  ;;  %v4209_v28 = vld [vmem:[%s5445_s3 + $0x4c0] sm:$0xff]   ;;  %v496_v29 = vadd.f32 %v495_v23, %v5009_v26 }
 0x14f   :  { %3817 = vmatprep.subr.bf16.mxu0 %v4173_v32  ;;  %v4212_v32 = vld [vmem:[%s5445_s3 + $0x360] sm:$0xff]  }
 0x150   :  { %v4246_v23 = vld [vmem:[%s5445_s3 + $0x420] sm:$0xff]  }
 0x151   :  { %3742 = vmatpush3.bf16.msra.mxu1 %v4174_v33  ;;  %v536_v33 = vmax.f32 %v484_v25, 0.0  ;;  %v4247_v25 = vld [vmem:[%s5445_s3 + $0x6b8] sm:$0xff]  }
 0x152   :  { %3818 = vmatpush3.bf16.msra.mxu0 %v4175_v35  ;;  %3743 = vmatprep.subr.bf16.mxu1 %v4176_v36  ;;  %v4213_v35 = vld [vmem:[%s5445_s3 + $0x5f8] sm:$0xff]   ;;  %v541_v36 = vmax.f32 %v496_v29, 0.0  ;;  %v4249_v29 = vld [vmem:[%s5445_s3 + $0x6f0] sm:$0xff]  }
 0x153   :  { %3819 = vmatprep.subr.bf16.mxu0 %v4177_v40  ;;  %v632_v39 = vpack.c.bf16 %v536_v33, %v536_v33  ;;  %v4216_v40 = vld [vmem:[%s5445_s3 + $0x358] sm:$0xff]   ;;  %v4252_v33 = vld [vmem:[%s5445_s3 + $0x450] sm:$0xff]  }
 0x155   :  { %3744 = vmatpush3.bf16.msra.mxu1 %v4178_v44  ;;  %v637_v44 = vpack.c.bf16 %v541_v36, %v541_v36  ;;  %v4254_v36 = vld [vmem:[%s5445_s3 + $0x410] sm:$0xff]  }
 0x156   :  { %3820 = vmatpush3.bf16.msra.mxu0 %v4179_v41  ;;  %3745 = vmatprep.subr.bf16.mxu1 %v4180_v45  ;;  %v4218_v41 = vld [vmem:[%s5445_s3 + $0x318] sm:$0xff]   ;;  %v4219_v45 = vld [vmem:[%s5445_s3 + $0x5b0] sm:$0xff]  }
 0x157   :  { %3849 = vmatprep.subr.bf16.mxu0 %v4181_v47  ;;  %v4221_v47 = vld [vmem:[%s5445_s3 + $0x5e8] sm:$0xff]  }
 0x159   :  { %3014 = vmatmul.mubr.bf16.vlgmr.msra.gmra.mxu0 %v628_v52  ;;  %3746 = vmatpush3.bf16.msra.mxu1 %v4182_v49  ;;  %v4223_v49 = vld [vmem:[%s5445_s3 + $0x5a8] sm:$0xff]   ;;  %v4225_v52 = vld [vmem:[%s5445_s3 + $0x5e0] sm:$0xff]  }
 0x15a   :  { %3850 = vmatpush3.bf16.msra.mxu0 %v4183_v51  ;;  %3093 = vmatprep.mubr.bf16.mxu0 %v633_v55  ;;  %v4224_v51 = vld [vmem:[%s5445_s3 + $0x348] sm:$0xff]   ;;  %v470_v55 = vadd.f32 %v4736_v27, %v4953_v2  ;;  %v4229_v27 = vld [vmem:[%s5445_s3 + $0x5d8] sm:$0xff]   ;;  %v4233_v2 = vld [vmem:[%s5445_s3 + $0x5d0] sm:$0xff]  }
 0x15b   :  { %3747 = vmatprep.subr.bf16.mxu1 %v4184_v53  ;;  %3851 = vmatprep.subr.bf16.mxu0 %v4185_v54  ;;  %v4226_v53 = vld [vmem:[%s5445_s3 + $0x308] sm:$0xff]   ;;  %v5066_v54 = vpop.permute.xlu0 %127 }
 0x15d   :  { %3748 = vmatpush3.bf16.msra.mxu1 %v4186_v56  ;;  %v4227_v56 = vld [vmem:[%s5445_s3 + $0x5a0] sm:$0xff]  }
 0x15e   :  { %3852 = vmatpush3.bf16.msra.mxu0 %v4187_v57  ;;  %3749 = vmatprep.subr.bf16.mxu1 %v4188_v58  ;;  %v4228_v57 = vld [vmem:[%s5445_s3 + $0x340] sm:$0xff]   ;;  %v482_v58 = vadd.f32 %v4869_v24, %v5066_v54  ;;  %v4232_v24 = vld [vmem:[%s5445_s3 + $0x478] sm:$0xff]  }
 0x15f   :  { %3853 = vmatprep.subr.bf16.mxu0 %v4189_v59  ;;  %v5078_v59 = vpop.f32.mrf.mxu0 }
 0x161   :  { %3750 = vmatpush3.bf16.msra.mxu1 %v4190_v60  ;;  %v4230_v60 = vld [vmem:[%s5445_s3 + $0x300] sm:$0xff]  }
 0x162   :  { %3854 = vmatpush3.bf16.msra.mxu0 %v4191_v61  ;;  %3751 = vmatprep.subr.bf16.mxu1 %v4192_v62  ;;  %v530_v61 = vmax.f32 %v470_v55, 0.0  ;;  %v4231_v62 = vld [vmem:[%s5445_s3 + $0x598] sm:$0xff]  }
 0x163   :  { %3855 = vmatprep.subr.bf16.mxu0 %v4193_v63  ;;  %v535_v63 = vmax.f32 %v482_v58, 0.0  ;;  %v4267_v58 = vld [vmem:[%s5445_s3 + $0x690] sm:$0xff]  }
 0x165   :  { %3752 = vmatpush3.bf16.msra.mxu1 %v4194_v1  ;;  %v5092_v1 = vpop.f32.mrf.mxu0 }
 0x166   :  { %3856 = vmatpush3.bf16.msra.mxu0 %v4195_v5  ;;  %3753 = vmatprep.subr.bf16.mxu1 %v4196_v6  ;;  %v626_v5 = vpack.c.bf16 %v530_v61, %v530_v61  ;;  %v4235_v6 = vld [vmem:[%s5445_s3 + $0x590] sm:$0xff]   ;;  %v4269_v61 = vld [vmem:[%s5445_s3 + $0x6c8] sm:$0xff]  }
 0x167   :  { %3857 = vmatprep.subr.bf16.mxu0 %v4197_v0  ;;  %v631_v0 = vpack.c.bf16 %v535_v63, %v535_v63  ;;  %v4270_v63 = vld [vmem:[%s5445_s3 + $0x530] sm:$0xff]  }
 0x169   :  { %3754 = vmatpush3.bf16.msra.mxu1 %v4198_v9  ;;  %v5106_v9 = vpop.f32.mrf.mxu0 }
 0x16a   :  { %3858 = vmatpush3.bf16.msra.mxu0 %v4199_v11  ;;  %3783 = vmatprep.subr.bf16.mxu1 %v4200_v34  ;;  %v4238_v11 = vld [vmem:[%s5445_s3 + $0x430] sm:$0xff]   ;;  %v4239_v34 = vld [vmem:[%s5445_s3 + $0x588] sm:$0xff]  }
 0x16b   :  { %3859 = vmatprep.subr.bf16.mxu0 %v4201_v14  ;;  %v505_v14 = vpop.f32.mrf.mxu0 }
 0x16c   :  { %2894 = vmatmul.mubr.bf16.vlgmr.msra.gmra.mxu1 %v622_v16  ;;  %v5122_v16 = vpop.permute.xlu1 %152 }
 0x16d   :  { %3784 = vmatpush3.bf16.msra.mxu1 %v4202_v15  ;;  %2973 = vmatprep.mubr.bf16.mxu1 %v627_v19  ;;  %v494_v15 = vadd.f32 %v4993_v42, %v5009_v26  ;;  %v4242_v19 = vld [vmem:[%s5445_s3 + $0x428] sm:$0xff]   ;;  %v4243_v42 = vld [vmem:[%s5445_s3 + $0x580] sm:$0xff]  }
 0x16e   :  { %3860 = vmatpush3.bf16.msra.mxu0 %v4203_v17  ;;  %3785 = vmatprep.subr.bf16.mxu1 %v4204_v18  ;;  %v4241_v17 = vld [vmem:[%s5445_s3 + $0x5c0] sm:$0xff]   ;;  %v506_v18 = vadd.f32 %v505_v14, %v5122_v16 }
 0x16f   :  { %3861 = vmatprep.subr.bf16.mxu0 %v4205_v50  ;;  %v4244_v50 = vld [vmem:[%s5445_s3 + $0x460] sm:$0xff]  }
 0x170   :  { %v4278_v14 = vld [vmem:[%s5445_s3 + $0x520] sm:$0xff]  }
 0x171   :  { %3786 = vmatpush3.bf16.msra.mxu1 %v4206_v21  ;;  %v540_v21 = vmax.f32 %v494_v15, 0.0  ;;  %v4279_v15 = vld [vmem:[%s5445_s3 + $0x7b8] sm:$0xff]  }
 0x172   :  { %3862 = vmatpush3.bf16.msra.mxu0 %v4207_v22  ;;  %3787 = vmatprep.subr.bf16.mxu1 %v4208_v4  ;;  %v4245_v22 = vld [vmem:[%s5445_s3 + $0x6f8] sm:$0xff]   ;;  %v545_v4 = vmax.f32 %v506_v18, 0.0  ;;  %v4281_v18 = vld [vmem:[%s5445_s3 + $0x7f0] sm:$0xff]  }
 0x173   :  { %3863 = vmatprep.subr.bf16.mxu0 %v4209_v28  ;;  %v636_v26 = vpack.c.bf16 %v540_v21, %v540_v21  ;;  %v4248_v28 = vld [vmem:[%s5445_s3 + $0x458] sm:$0xff]   ;;  %v4284_v21 = vld [vmem:[%s5445_s3 + $0x550] sm:$0xff]  }
 0x175   :  { %3788 = vmatpush3.bf16.msra.mxu1 %v4210_v30  ;;  %v641_v30 = vpack.c.bf16 %v545_v4, %v545_v4  ;;  %v4286_v4 = vld [vmem:[%s5445_s3 + $0x510] sm:$0xff]  }
 0x176   :  { %3864 = vmatpush3.bf16.msra.mxu0 %v4211_v31  ;;  %3789 = vmatprep.subr.bf16.mxu1 %v4212_v32  ;;  %v4250_v31 = vld [vmem:[%s5445_s3 + $0x418] sm:$0xff]   ;;  %v4251_v32 = vld [vmem:[%s5445_s3 + $0x6b0] sm:$0xff]  }
 0x177   :  { %3893 = vmatprep.subr.bf16.mxu0 %v4213_v35  ;;  %v4253_v35 = vld [vmem:[%s5445_s3 + $0x6e8] sm:$0xff]  }
 0x179   :  { %3094 = vmatmul.mubr.bf16.vlgmr.msra.gmra.mxu0 %v632_v39  ;;  %3790 = vmatpush3.bf16.msra.mxu1 %v4214_v37  ;;  %v4255_v37 = vld [vmem:[%s5445_s3 + $0x6a8] sm:$0xff]   ;;  %v4257_v39 = vld [vmem:[%s5445_s3 + $0x6e0] sm:$0xff]  }
 0x17a   :  { %3894 = vmatpush3.bf16.msra.mxu0 %v4215_v38  ;;  %3173 = vmatprep.mubr.bf16.mxu0 %v637_v44  ;;  %v4256_v38 = vld [vmem:[%s5445_s3 + $0x448] sm:$0xff]   ;;  %v480_v44 = vadd.f32 %v4855_v20, %v5066_v54  ;;  %v4261_v20 = vld [vmem:[%s5445_s3 + $0x6d8] sm:$0xff]   ;;  %v4265_v54 = vld [vmem:[%s5445_s3 + $0x6d0] sm:$0xff]  }
 0x17b   :  { %3791 = vmatprep.subr.bf16.mxu1 %v4216_v40  ;;  %3895 = vmatprep.subr.bf16.mxu0 %v4217_v43  ;;  %v4258_v40 = vld [vmem:[%s5445_s3 + $0x408] sm:$0xff]   ;;  %v5179_v43 = vpop.permute.xlu0 %137 }
 0x17d   :  { %3792 = vmatpush3.bf16.msra.mxu1 %v4218_v41  ;;  %v4259_v41 = vld [vmem:[%s5445_s3 + $0x6a0] sm:$0xff]  }
 0x17e   :  { %3896 = vmatpush3.bf16.msra.mxu0 %v4219_v45  ;;  %3793 = vmatprep.subr.bf16.mxu1 %v4220_v46  ;;  %v4260_v45 = vld [vmem:[%s5445_s3 + $0x440] sm:$0xff]   ;;  %v492_v46 = vadd.f32 %v4979_v13, %v5179_v43  ;;  %v4264_v13 = vld [vmem:[%s5445_s3 + $0x578] sm:$0xff]  }
 0x17f   :  { %3897 = vmatprep.subr.bf16.mxu0 %v4221_v47  ;;  %v5191_v47 = vpop.f32.mrf.mxu0 }
 0x181   :  { %3794 = vmatpush3.bf16.msra.mxu1 %v4222_v48  ;;  %v4262_v48 = vld [vmem:[%s5445_s3 + $0x400] sm:$0xff]  }
 0x182   :  { %3898 = vmatpush3.bf16.msra.mxu0 %v4223_v49  ;;  %3795 = vmatprep.subr.bf16.mxu1 %v4224_v51  ;;  %v534_v49 = vmax.f32 %v480_v44, 0.0  ;;  %v4263_v51 = vld [vmem:[%s5445_s3 + $0x698] sm:$0xff]   ;;  %v4299_v44 = vld [vmem:[%s5445_s3 + $0x790] sm:$0xff]  }
 0x183   :  { %3899 = vmatprep.subr.bf16.mxu0 %v4225_v52  ;;  %v539_v52 = vmax.f32 %v492_v46, 0.0  ;;  %v4301_v46 = vld [vmem:[%s5445_s3 + $0x7c8] sm:$0xff]  }
 0x185   :  { %3796 = vmatpush3.bf16.msra.mxu1 %v4226_v53  ;;  %v5205_v53 = vpop.f32.mrf.mxu0 }
 0x186   :  { %3900 = vmatpush3.bf16.msra.mxu0 %v4227_v56  ;;  %3797 = vmatprep.subr.bf16.mxu1 %v4228_v57  ;;  %v4266_v56 = vld [vmem:[%s5445_s3 + $0x538] sm:$0xff]   ;;  %v630_v57 = vpack.c.bf16 %v534_v49, %v534_v49 }
 0x187   :  { %3901 = vmatprep.subr.bf16.mxu0 %v4229_v27  ;;  %v5210_v55 = vpop.f32.mrf.mxu0  ;;  %v4268_v27 = vld [vmem:[%s5445_s3 + $0x570] sm:$0xff]  }
 0x189   :  { %3798 = vmatpush3.bf16.msra.mxu1 %v4230_v60  ;;  %v635_v60 = vpack.c.bf16 %v539_v52, %v539_v52 }
 0x18a   :  { %3902 = vmatpush3.bf16.msra.mxu0 %v4231_v62  ;;  %3827 = vmatprep.subr.bf16.mxu1 %v4232_v24  ;;  %v5224_v62 = vpop.permute.xlu1 %162  ;;  %v515_v24 = vpop.f32.mrf.mxu0 }
 0x18b   :  { %3903 = vmatprep.subr.bf16.mxu0 %v4233_v2  ;;  %v4271_v2 = vld [vmem:[%s5445_s3 + $0x688] sm:$0xff]   ;;  %v514_v52 = vadd.f32 %v5210_v55, %v5224_v62  ;;  %v4308_v55 = vld [vmem:[%s5445_s3 + $0x660] sm:$0xff]  }
 0x18c   :  { %2974 = vmatmul.mubr.bf16.vlgmr.msra.gmra.mxu1 %v626_v5  ;;  %v504_v5 = vadd.f32 %v5106_v9, %v5122_v16  ;;  %v4276_v9 = vld [vmem:[%s5445_s3 + $0x560] sm:$0xff]  }
 0x18d   :  { %3828 = vmatpush3.bf16.msra.mxu1 %v4234_v3  ;;  %3053 = vmatprep.mubr.bf16.mxu1 %v631_v0  ;;  %v4272_v3 = vld [vmem:[%s5445_s3 + $0x568] sm:$0xff]  }
 0x18e   :  { %3904 = vmatpush3.bf16.msra.mxu0 %v4235_v6  ;;  %3829 = vmatprep.subr.bf16.mxu1 %v4236_v7  ;;  %v4273_v6 = vld [vmem:[%s5445_s3 + $0x6c0] sm:$0xff]   ;;  %v516_v7 = vadd.f32 %v515_v24, %v5224_v62  ;;  %v4274_v0 = vld [vmem:[%s5445_s3 + $0x528] sm:$0xff]   ;;  %v4310_v24 = vld [vmem:[%s5445_s3 + $0x658] sm:$0xff]  }
 0x18f   :  { %3905 = vmatprep.subr.bf16.mxu0 %v4237_v10  ;;  %v4275_v10 = vld [vmem:[%s5445_s3 + $0x680] sm:$0xff]  }
 0x190   :  { %v4309_v62 = vld [vmem:[%s5445_s3 + $0x620] sm:$0xff]  }
 0x191   :  { %3830 = vmatpush3.bf16.msra.mxu1 %v4238_v11  ;;  %v544_v11 = vmax.f32 %v504_v5, 0.0  ;;  %v4312_v5 = vld [vmem:[%s5445_s3 + $0x650] sm:$0xff]  }
 0x192   :  { %3906 = vmatpush3.bf16.msra.mxu0 %v4239_v34  ;;  %3831 = vmatprep.subr.bf16.mxu1 %v4240_v12  ;;  %v4277_v34 = vld [vmem:[%s5445_s3 + $0x7f8] sm:$0xff]   ;;  %v549_v12 = vmax.f32 %v516_v7, 0.0 }
 0x193   :  { %3907 = vmatprep.subr.bf16.mxu0 %v4241_v17  ;;  %v640_v16 = vpack.c.bf16 %v544_v11, %v544_v11  ;;  %v4280_v17 = vld [vmem:[%s5445_s3 + $0x558] sm:$0xff]  }
 0x195   :  { %3832 = vmatpush3.bf16.msra.mxu1 %v4242_v19  ;;  %v645_v19 = vpack.c.bf16 %v549_v12, %v549_v12 }
 0x196   :  { %3908 = vmatpush3.bf16.msra.mxu0 %v4243_v42  ;;  %3833 = vmatprep.subr.bf16.mxu1 %v4244_v50  ;;  %v4282_v42 = vld [vmem:[%s5445_s3 + $0x518] sm:$0xff]   ;;  %v4283_v50 = vld [vmem:[%s5445_s3 + $0x7b0] sm:$0xff]  }
 0x197   :  { %3937 = vmatprep.subr.bf16.mxu0 %v4245_v22  ;;  %v4285_v22 = vld [vmem:[%s5445_s3 + $0x7e8] sm:$0xff]  }
 0x199   :  { %3174 = vmatmul.mubr.bf16.vlgmr.msra.gmra.mxu0 %v636_v26  ;;  %3834 = vmatpush3.bf16.msra.mxu1 %v4246_v23  ;;  %v4287_v23 = vld [vmem:[%s5445_s3 + $0x7a8] sm:$0xff]   ;;  %v4289_v26 = vld [vmem:[%s5445_s3 + $0x7e0] sm:$0xff]  }
 0x19a   :  { %3938 = vmatpush3.bf16.msra.mxu0 %v4247_v25  ;;  %3253 = vmatprep.mubr.bf16.mxu0 %v641_v30  ;;  %v4288_v25 = vld [vmem:[%s5445_s3 + $0x548] sm:$0xff]   ;;  %v490_v30 = vadd.f32 %v4965_v8, %v5179_v43  ;;  %v4294_v8 = vld [vmem:[%s5445_s3 + $0x500] sm:$0xff]  }
 0x19b   :  { %3835 = vmatprep.subr.bf16.mxu1 %v4248_v28  ;;  %3939 = vmatprep.subr.bf16.mxu0 %v4249_v29  ;;  %v4290_v28 = vld [vmem:[%s5445_s3 + $0x508] sm:$0xff]   ;;  %v5292_v29 = vpop.permute.xlu0 %147 }
 0x19d   :  { %3836 = vmatpush3.bf16.msra.mxu1 %v4250_v31  ;;  %v4291_v31 = vld [vmem:[%s5445_s3 + $0x7a0] sm:$0xff]  }
 0x19e   :  { %3940 = vmatpush3.bf16.msra.mxu0 %v4251_v32  ;;  %3837 = vmatprep.subr.bf16.mxu1 %v4252_v33  ;;  %v4292_v32 = vld [vmem:[%s5445_s3 + $0x540] sm:$0xff]   ;;  %v502_v33 = vadd.f32 %v5092_v1, %v5292_v29  ;;  %v4296_v1 = vld [vmem:[%s5445_s3 + $0x678] sm:$0xff]  }
 0x19f   :  { %3941 = vmatprep.subr.bf16.mxu0 %v4253_v35  ;;  %v4293_v35 = vld [vmem:[%s5445_s3 + $0x7d8] sm:$0xff]   ;;  %v158_v12 = vpop.permute.xlu0 %157 }
 0x1a1   :  { %3838 = vmatpush3.bf16.msra.mxu1 %v4254_v36  ;;  %v538_v36 = vmax.f32 %v490_v30, 0.0 }
 0x1a2   :  { %3942 = vmatpush3.bf16.msra.mxu0 %v4255_v37  ;;  %3839 = vmatprep.subr.bf16.mxu1 %v4256_v38  ;;  %v4295_v37 = vld [vmem:[%s5445_s3 + $0x798] sm:$0xff]   ;;  %v543_v38 = vmax.f32 %v502_v33, 0.0 }
 0x1a3   :  { %3943 = vmatprep.subr.bf16.mxu0 %v4257_v39  ;;  %v4297_v39 = vld [vmem:[%s5445_s3 + $0x7d0] sm:$0xff]   ;;  %v634_v43 = vpack.c.bf16 %v538_v36, %v538_v36  ;;  %v4326_v36 = vld [vmem:[%s5445_s3 + $0x758] sm:$0xff]  }
 0x1a5   :  { %3840 = vmatpush3.bf16.msra.mxu1 %v4258_v40  ;;  %v4298_v40 = vld [vmem:[%s5445_s3 + $0x638] sm:$0xff]  }
 0x1a6   :  { %3944 = vmatpush3.bf16.msra.mxu0 %v4259_v41  ;;  %3841 = vmatprep.subr.bf16.mxu1 %v4260_v45  ;;  %v4300_v41 = vld [vmem:[%s5445_s3 + $0x670] sm:$0xff]   ;;  %v639_v45 = vpack.c.bf16 %v543_v38, %v543_v38 }
 0x1a7   :  { %3945 = vmatprep.subr.bf16.mxu0 %v4261_v20  ;;  %v4328_v38 = vld [vmem:[%s5445_s3 + $0x750] sm:$0xff]  }
 0x1a9   :  { %3842 = vmatpush3.bf16.msra.mxu1 %v4262_v48  ;;  %v4302_v48 = vld [vmem:[%s5445_s3 + $0x630] sm:$0xff]  }
 0x1aa   :  { %3946 = vmatpush3.bf16.msra.mxu0 %v4263_v51  ;;  %3871 = vmatprep.subr.bf16.mxu1 %v4264_v13  ;;  %v4303_v51 = vld [vmem:[%s5445_s3 + $0x788] sm:$0xff]  }
 0x1ab   :  { %3947 = vmatprep.subr.bf16.mxu0 %v4265_v54  ;;  %v4304_v13 = vld [vmem:[%s5445_s3 + $0x668] sm:$0xff]  }
 0x1ac   :  { %3054 = vmatmul.mubr.bf16.vlgmr.msra.gmra.mxu1 %v630_v57 }
 0x1ad   :  { %3872 = vmatpush3.bf16.msra.mxu1 %v4266_v56  ;;  %3133 = vmatprep.mubr.bf16.mxu1 %v635_v60  ;;  %v4305_v56 = vld [vmem:[%s5445_s3 + $0x7c0] sm:$0xff]  }
 0x1ae   :  { %3948 = vmatpush3.bf16.msra.mxu0 %v4267_v58  ;;  %3873 = vmatprep.subr.bf16.mxu1 %v4268_v27  ;;  %v4306_v58 = vld [vmem:[%s5445_s3 + $0x628] sm:$0xff]   ;;  %v4307_v60 = vld [vmem:[%s5445_s3 + $0x780] sm:$0xff]  }
 0x1af   :  { %3949 = vmatprep.subr.bf16.mxu0 %v4269_v61  ;;  %v548_v61 = vmax.f32 %v514_v52, 0.0 }
 0x1b1   :  { %3874 = vmatpush3.bf16.msra.mxu1 %v4270_v63  ;;  %v644_v63 = vpack.c.bf16 %v548_v61, %v548_v61 }
 0x1b2   :  { %3950 = vmatpush3.bf16.msra.mxu0 %v4271_v2  ;;  %3875 = vmatprep.subr.bf16.mxu1 %v4272_v3  ;;  %v4311_v3 = vld [vmem:[%s5445_s3 + $0x618] sm:$0xff]  }
 0x1b3   :  { %3951 = vmatprep.subr.bf16.mxu0 %v4273_v6 }
 0x1b5   :  { %3876 = vmatpush3.bf16.msra.mxu1 %v4274_v0 }
 0x1b6   :  { %3952 = vmatpush3.bf16.msra.mxu0 %v4275_v10  ;;  %3877 = vmatprep.subr.bf16.mxu1 %v4276_v9  ;;  %v4313_v10 = vld [vmem:[%s5445_s3 + $0x610] sm:$0xff]   ;;  %v4314_v9 = vld [vmem:[%s5445_s3 + $0x648] sm:$0xff]  }
 0x1b7   :  { %3981 = vmatprep.subr.bf16.mxu0 %v4277_v34  ;;  %v4315_v34 = vld [vmem:[%s5445_s3 + $0x608] sm:$0xff]  }
 0x1b9   :  { %3254 = vmatmul.mubr.bf16.vlgmr.msra.gmra.mxu0 %v640_v16  ;;  %3878 = vmatpush3.bf16.msra.mxu1 %v4278_v14  ;;  %v500_v14 = vadd.f32 %v5078_v59, %v5292_v29  ;;  %v512_v16 = vadd.f32 %v5205_v53, %v158_v12  ;;  %v4319_v59 = vld [vmem:[%s5445_s3 + $0x738] sm:$0xff]   ;;  %v4320_v53 = vld [vmem:[%s5445_s3 + $0x770] sm:$0xff]  }
 0x1ba   :  { %3982 = vmatpush3.bf16.msra.mxu0 %v4279_v15  ;;  %3333 = vmatprep.mubr.bf16.mxu0 %v645_v19  ;;  %v4316_v15 = vld [vmem:[%s5445_s3 + $0x640] sm:$0xff]   ;;  %v4318_v19 = vld [vmem:[%s5445_s3 + $0x778] sm:$0xff]  }
 0x1bb   :  { %3879 = vmatprep.subr.bf16.mxu1 %v4280_v17  ;;  %3983 = vmatprep.subr.bf16.mxu0 %v4281_v18  ;;  %v4317_v17 = vld [vmem:[%s5445_s3 + $0x600] sm:$0xff]   ;;  %v542_v18 = vmax.f32 %v500_v14, 0.0 }
 0x1bd   :  { %3880 = vmatpush3.bf16.msra.mxu1 %v4282_v42  ;;  %v547_v42 = vmax.f32 %v512_v16, 0.0 }
 0x1be   :  { %3984 = vmatpush3.bf16.msra.mxu0 %v4283_v50  ;;  %3881 = vmatprep.subr.bf16.mxu1 %v4284_v21  ;;  %v638_v50 = vpack.c.bf16 %v542_v18, %v542_v18 }
 0x1bf   :  { %3985 = vmatprep.subr.bf16.mxu0 %v4285_v22  ;;  %v643_v21 = vpack.c.bf16 %v547_v42, %v547_v42  ;;  %v3394_v22 = vld [vmem:[%s5446_s4] ss:$0 sm:$0xff] }
 0x1c1   :  { %3882 = vmatpush3.bf16.msra.mxu1 %v4286_v4 }
 0x1c2   :  { %3986 = vmatpush3.bf16.msra.mxu0 %v4287_v23  ;;  %3883 = vmatprep.subr.bf16.mxu1 %v4288_v25  ;;  %v4321_v23 = vld [vmem:[%s5445_s3 + $0x730] sm:$0xff]  }
 0x1c3   :  { %3987 = vmatprep.subr.bf16.mxu0 %v4289_v26  ;;  %v4322_v26 = vld [vmem:[%s5445_s3 + $0x768] sm:$0xff]  }
 0x1c5   :  { %3884 = vmatpush3.bf16.msra.mxu1 %v4290_v28 }
 0x1c6   :  { %3988 = vmatpush3.bf16.msra.mxu0 %v4291_v31  ;;  %3885 = vmatprep.subr.bf16.mxu1 %v4292_v32  ;;  %v4323_v32 = vld [vmem:[%s5445_s3 + $0x728] sm:$0xff]  }
 0x1c7   :  { %3989 = vmatprep.subr.bf16.mxu0 %v4293_v35  ;;  %v4324_v35 = vld [vmem:[%s5445_s3 + $0x760] sm:$0xff]  }
 0x1c9   :  { %3886 = vmatpush3.bf16.msra.mxu1 %v4294_v8  ;;  %v4325_v8 = vld [vmem:[%s5445_s3 + $0x720] sm:$0xff]  }
 0x1ca   :  { %3990 = vmatpush3.bf16.msra.mxu0 %v4295_v37  ;;  %3915 = vmatprep.subr.bf16.mxu1 %v4296_v1  ;;  %v4327_v1 = vld [vmem:[%s5445_s3 + $0x718] sm:$0xff]  }
 0x1cb   :  { %3991 = vmatprep.subr.bf16.mxu0 %v4297_v39 }
 0x1cc   :  { %3134 = vmatmul.mubr.bf16.vlgmr.msra.gmra.mxu1 %v634_v43  ;;  %v3667_v20 = vpop.f32.mrf.mxu1 }
 0x1cd   :  { %3916 = vmatpush3.bf16.msra.mxu1 %v4298_v40  ;;  %3213 = vmatprep.mubr.bf16.mxu1 %v639_v45 }
 0x1ce   :  { %3992 = vmatpush3.bf16.msra.mxu0 %v4299_v44  ;;  %v3668_v49 = vpop.f32.mrf.mxu1  ;;  %3917 = vmatprep.subr.bf16.mxu1 %v4300_v41  ;;  %v4329_v44 = vld [vmem:[%s5445_s3 + $0x710] sm:$0xff]   ;;  %v4330_v41 = vld [vmem:[%s5445_s3 + $0x748] sm:$0xff]  }
 0x1cf   :  { %v3669_v54 = vadd.f32 %v3668_v49, %v3667_v20  ;;  %3993 = vmatprep.subr.bf16.mxu0 %v4301_v46  ;;  %v4331_v46 = vld [vmem:[%s5445_s3 + $0x708] sm:$0xff]   ;;  %v510_v20 = vadd.f32 %v5191_v47, %v158_v12  ;;  %v4333_v49 = vld [vmem:[%s5445_s3 + $0x700] sm:$0xff]  }
 0x1d0   :  { %v3670_v57 = vpop.f32.mrf.mxu1 }
 0x1d1   :  { %3918 = vmatpush3.bf16.msra.mxu1 %v4302_v48  ;;  %v2736_v28 = vadd.f32 %v3669_v54, %v3394_v22  ;;  %v4332_v48 = vld [vmem:[%s5445_s3 + $0x740] sm:$0xff]  }
 0x1d2   :  { %3994 = vmatpush3.bf16.msra.mxu0 %v4303_v51  ;;  %v3671_v27 = vpop.f32.mrf.mxu1  ;;  %3919 = vmatprep.subr.bf16.mxu1 %v4304_v13  ;;  %v546_v51 = vmax.f32 %v510_v20, 0.0 }
 0x1d3   :  { %3995 = vmatprep.subr.bf16.mxu0 %v4305_v56 }
 0x1d4   :  { %v642_v13 = vpack.c.bf16 %v546_v51, %v546_v51 }
 0x1d5   :  { %3920 = vmatpush3.bf16.msra.mxu1 %v4306_v58 }
 0x1d6   :  { %3996 = vmatpush3.bf16.msra.mxu0 %v4307_v60  ;;  %3921 = vmatprep.subr.bf16.mxu1 %v4308_v55 }
 0x1d8   :  { %v3733_v2 = vpop.f32.mrf.mxu0 }
 0x1d9   :  { %3334 = vmatmul.mubr.bf16.vlgmr.msra.gmra.mxu0 %v644_v63  ;;  %3922 = vmatpush3.bf16.msra.mxu1 %v4309_v62 }
 0x1da   :  { %3923 = vmatprep.subr.bf16.mxu1 %v4310_v24  ;;  %v3734_v6 = vpop.f32.mrf.mxu0 }
 0x1db   :  { %v5366_v7 = vadd.f32 %v3734_v6, %v3733_v2 }
 0x1dc   :  { %v3736_v0 = vpop.f32.mrf.mxu0 }
 0x1dd   :  { %3924 = vmatpush3.bf16.msra.mxu1 %v4311_v3 }
 0x1de   :  { %3925 = vmatprep.subr.bf16.mxu1 %v4312_v5  ;;  %v3737_v11 = vpop.f32.mrf.mxu0 }
 0x1e1   :  { %3926 = vmatpush3.bf16.msra.mxu1 %v4313_v10 }
 0x1e2   :  { %3927 = vmatprep.subr.bf16.mxu1 %v4314_v9 }
 0x1e5   :  { %3928 = vmatpush3.bf16.msra.mxu1 %v4315_v34 }
 0x1e6   :  { %3929 = vmatprep.subr.bf16.mxu1 %v4316_v15 }
 0x1e9   :  { %3930 = vmatpush3.bf16.msra.mxu1 %v4317_v17 }
 0x1ea   :  { %3959 = vmatprep.subr.bf16.mxu1 %v4318_v19 }
 0x1ec   :  { %v3689_v4 = vpop.f32.mrf.mxu1  ;;  %3214 = vmatmul.mubr.bf16.vlgmr.msra.gmra.mxu1 %v638_v50 }
 0x1ed   :  { %3960 = vmatpush3.bf16.msra.mxu1 %v4319_v59  ;;  %3293 = vmatprep.mubr.bf16.mxu1 %v643_v21 }
 0x1ee   :  { %v3690_v25 = vpop.f32.mrf.mxu1  ;;  %3961 = vmatprep.subr.bf16.mxu1 %v4320_v53 }
 0x1ef   :  { %v3691_v29 = vadd.f32 %v3690_v25, %v3689_v4 }
 0x1f0   :  { %v3692_v30 = vpop.f32.mrf.mxu1 }
 0x1f1   :  { %v2776_v31 = vadd.f32 %v3691_v29, %v2736_v28  ;;  %3962 = vmatpush3.bf16.msra.mxu1 %v4321_v23 }
 0x1f2   :  { %v3693_v33 = vpop.f32.mrf.mxu1  ;;  %3963 = vmatprep.subr.bf16.mxu1 %v4322_v26 }
 0x1f5   :  { %3964 = vmatpush3.bf16.msra.mxu1 %v4323_v32 }
 0x1f6   :  { %3965 = vmatprep.subr.bf16.mxu1 %v4324_v35 }
 0x1f8   :  { %v3777_v37 = vpop.f32.mrf.mxu0 }
 0x1f9   :  { %3966 = vmatpush3.bf16.msra.mxu1 %v4325_v8 }
 0x1fa   :  { %3967 = vmatprep.subr.bf16.mxu1 %v4326_v36  ;;  %v3778_v39 = vpop.f32.mrf.mxu0 }
 0x1fb   :  { %v3779_v40 = vadd.f32 %v3778_v39, %v3777_v37 }
 0x1fc   :  { %v3780_v43 = vpop.f32.mrf.mxu0 }
 0x1fd   :  { %3968 = vmatpush3.bf16.msra.mxu1 %v4327_v1 }
 0x1fe   :  { %3969 = vmatprep.subr.bf16.mxu1 %v4328_v38  ;;  %v3781_v45 = vpop.f32.mrf.mxu0 }
 0x201   :  { %3970 = vmatpush3.bf16.msra.mxu1 %v4329_v44 }
 0x202   :  { %3971 = vmatprep.subr.bf16.mxu1 %v4330_v41 }
 0x205   :  { %3972 = vmatpush3.bf16.msra.mxu1 %v4331_v46 }
 0x206   :  { %3973 = vmatprep.subr.bf16.mxu1 %v4332_v48 }
 0x209   :  { %3974 = vmatpush3.bf16.msra.mxu1 %v4333_v49 }
 0x20c   :  { %v3711_v52 = vpop.f32.mrf.mxu1  ;;  %3294 = vmatmul.mubr.bf16.vlgmr.msra.gmra.mxu1 %v642_v13 }
 0x20e   :  { %v3712_v54 = vpop.f32.mrf.mxu1 }
 0x20f   :  { %v3713_v56 = vadd.f32 %v3712_v54, %v3711_v52 }
 0x210   :  { %v3714_v57 = vpop.f32.mrf.mxu1 }
 0x211   :  { %v2816_v47 = vadd.f32 %v3713_v56, %v2776_v31 }
 0x212   :  { %v3715_v58 = vpop.f32.mrf.mxu1 }
 0x213   :  { %v2856_v27 = vadd.f32 %v5366_v7, %v2816_v47 }
 0x219   :  { %v3821_v60 = vpop.f32.mrf.mxu0 }
 0x21b   :  { %v3822_v55 = vpop.f32.mrf.mxu0 }
 0x21c   :  { %v3823_v61 = vadd.f32 %v3822_v55, %v3821_v60 }
 0x21d   :  { %v3824_v62 = vpop.f32.mrf.mxu0 }
 0x21f   :  { %v3825_v24 = vpop.f32.mrf.mxu0 }
 0x22c   :  { %v3755_v63 = vpop.f32.mrf.mxu1 }
 0x22e   :  { %v3756_v2 = vpop.f32.mrf.mxu1 }
 0x22f   :  { %v3757_v3 = vadd.f32 %v3756_v2, %v3755_v63 }
 0x230   :  { %v3758_v5 = vpop.f32.mrf.mxu1 }
 0x231   :  { %v2896_v6 = vadd.f32 %v3757_v3, %v2856_v27 }
 0x232   :  { %v3759_v0 = vpop.f32.mrf.mxu1 }
 0x233   :  { %v2936_v10 = vadd.f32 %v3779_v40, %v2896_v6 }
 0x239   :  { %v3865_v9 = vpop.f32.mrf.mxu0 }
 0x23b   :  { %v3866_v11 = vpop.f32.mrf.mxu0 }
 0x23c   :  { %v3867_v34 = vadd.f32 %v3866_v11, %v3865_v9 }
 0x23d   :  { %v3868_v12 = vpop.f32.mrf.mxu0 }
 0x23f   :  { %v3869_v14 = vpop.f32.mrf.mxu0 }
 0x24c   :  { %v3799_v15 = vpop.f32.mrf.mxu1 }
 0x24e   :  { %v3800_v16 = vpop.f32.mrf.mxu1 }
 0x24f   :  { %v3801_v7 = vadd.f32 %v3800_v16, %v3799_v15 }
 0x250   :  { %v3802_v17 = vpop.f32.mrf.mxu1 }
 0x251   :  { %v2976_v18 = vadd.f32 %v3801_v7, %v2936_v10 }
 0x252   :  { %v3803_v19 = vpop.f32.mrf.mxu1 }
 0x253   :  { %v3016_v42 = vadd.f32 %v3823_v61, %v2976_v18 }
 0x259   :  { %v3909_v59 = vpop.f32.mrf.mxu0 }
 0x25b   :  { %v3910_v50 = vpop.f32.mrf.mxu0 }
 0x25c   :  { %v3911_v53 = vadd.f32 %v3910_v50, %v3909_v59 }
 0x25d   :  { %v3912_v21 = vpop.f32.mrf.mxu0 }
 0x25f   :  { %v3913_v22 = vpop.f32.mrf.mxu0 }
 0x26c   :  { %v3843_v4 = vpop.f32.mrf.mxu1 }
 0x26e   :  { %v3844_v23 = vpop.f32.mrf.mxu1 }
 0x26f   :  { %v3845_v25 = vadd.f32 %v3844_v23, %v3843_v4 }
 0x270   :  { %v3846_v26 = vpop.f32.mrf.mxu1 }
 0x271   :  { %v3056_v28 = vadd.f32 %v3845_v25, %v3016_v42 }
 0x272   :  { %v3847_v29 = vpop.f32.mrf.mxu1 }
 0x273   :  { %v3096_v30 = vadd.f32 %v3867_v34, %v3056_v28 }
 0x279   :  { %v3953_v31 = vpop.f32.mrf.mxu0 }
 0x27b   :  { %v3954_v32 = vpop.f32.mrf.mxu0 }
 0x27c   :  { %v3955_v33 = vadd.f32 %v3954_v32, %v3953_v31 }
 0x27d   :  { %v3956_v35 = vpop.f32.mrf.mxu0 }
 0x27f   :  { %v3957_v8 = vpop.f32.mrf.mxu0 }
 0x28c   :  { %v3887_v36 = vpop.f32.mrf.mxu1 }
 0x28e   :  { %v3888_v37 = vpop.f32.mrf.mxu1 }
 0x28f   :  { %v3889_v1 = vadd.f32 %v3888_v37, %v3887_v36 }
 0x290   :  { %v3890_v38 = vpop.f32.mrf.mxu1 }
 0x291   :  { %v3136_v39 = vadd.f32 %v3889_v1, %v3096_v30 }
 0x292   :  { %v3891_v40 = vpop.f32.mrf.mxu1 }
 0x293   :  { %v3176_v43 = vadd.f32 %v3911_v53, %v3136_v39 }
 0x299   :  { %v3997_v44 = vpop.f32.mrf.mxu0 }
 0x29b   :  { %v3998_v41 = vpop.f32.mrf.mxu0 }
 0x29c   :  { %v3999_v27 = vadd.f32 %v3998_v41, %v3997_v44 }
 0x29d   :  { %v4000_v45 = vpop.f32.mrf.mxu0 }
 0x29f   :  { %v4001_v46 = vpop.f32.mrf.mxu0 }
 0x2ac   :  { %v3931_v20 = vpop.f32.mrf.mxu1 }
 0x2ae   :  { %v3932_v48 = vpop.f32.mrf.mxu1 }
 0x2af   :  { %v3933_v49 = vadd.f32 %v3932_v48, %v3931_v20 }
 0x2b0   :  { %v3934_v51 = vpop.f32.mrf.mxu1 }
 0x2b1   :  { %v3216_v13 = vadd.f32 %v3933_v49, %v3176_v43 }
 0x2b2   :  { %v3935_v52 = vpop.f32.mrf.mxu1 }
 0x2b3   :  { %v3256_v54 = vadd.f32 %v3955_v33, %v3216_v13 }
 0x2cc   :  { %v3975_v56 = vpop.f32.mrf.mxu1 }
 0x2ce   :  { %v3976_v57 = vpop.f32.mrf.mxu1 }
 0x2cf   :  { %v3977_v47 = vadd.f32 %v3976_v57, %v3975_v56 }
 0x2d0   :  { %v3978_v58 = vpop.f32.mrf.mxu1 }
 0x2d1   :  { %v3296_v60 = vadd.f32 %v3977_v47, %v3256_v54 }
 0x2d2   :  { %v3979_v55 = vpop.f32.mrf.mxu1 }
 0x2d3   :  { %v3336_v61 = vadd.f32 %v3999_v27, %v3296_v60 }
 0x2d5   :  { %3341 = vst [vmem:[%s5447_s5] sm:$0xff] %v3336_v61 }

</bundles_post_ra>
